<compile_context>
chip_gen: v7x
topology: tpu7x:2x2x1
jax: 0.10.0
libtpu: 0.0.40
codegen_flags: <defaults>
</compile_context>

<pallas_src>
import functools
import math

import jax
import jax.numpy as jnp
import numpy as np
from jax import lax
from jax.experimental import pallas as pl
from jax.experimental.pallas import tpu as pltpu

EPS = 1e-5                     # nn.BatchNorm2d default eps
_TILE_ELEMS = 1 << 20          # per-buffer row-tile budget (elements)


def _default_vmem_limit():
    # ~48 MiB on 64-MiB v7x, ~96 MiB on 128-MiB v5e/v6e; conservative fallback.
    try:
        cap = pltpu.get_tpu_info().vmem_capacity_bytes
        if cap and cap > 0:
            return int(min(100 * 1024 * 1024, max(32 * 1024 * 1024, cap * 3 // 4)))
    except Exception:
        pass
    return 48 * 1024 * 1024


VMEM_LIMIT = _default_vmem_limit()


# ----------------------------------------------------------------------------
# helpers
# ----------------------------------------------------------------------------
def _pad128(c):
    return ((c + 127) // 128) * 128


def _pad_vec(v, n):
    return jnp.zeros((n,), jnp.float32).at[: v.shape[0]].set(v.astype(jnp.float32))


def _uniform(key, shape, bound):
    return jax.random.uniform(key, shape, jnp.float32, -bound, bound)


def _pick_tile(m, lanes):
    """Largest row tile that divides m and respects a per-buffer VMEM budget."""
    cap = max(8, _TILE_ELEMS // max(lanes, 1))
    if m <= cap:
        return m
    if m % 8 != 0:
        return m
    t = 8
    while t * 2 <= cap and m % (t * 2) == 0:
        t *= 2
    return t


# ----------------------------------------------------------------------------
# Pallas kernels
# ----------------------------------------------------------------------------
def _conv3x3_kernel(xt_ref, xm_ref, xb_ref, w_ref, b_ref, y_ref, st_ref):
    """One grid step = one output row (n, h); all 9 taps in one step.

    xt/xm/xb_ref : (1, 1, W, Cp) bf16  rows h-1 / h / h+1 (clamped; masked at edges)
    w_ref        : (3, 3*Cp, Qp) bf16  resident weight, kw-major along K
    b_ref        : (1, Qp) f32         conv bias
    y_ref        : (1, 1, W, Qp) bf16  pre-BN conv output row
    st_ref       : (1, 2, Qp) f32      per-image running (sum, sum^2)
    """
    j = pl.program_id(1)
    nh = pl.num_programs(1)
    wout = y_ref.shape[2]
    cp = xm_ref.shape[3]

    @pl.when(j == 0)
    def _zero_stats():
        st_ref[...] = jnp.zeros_like(st_ref)

    zrow = jnp.zeros((1, cp), xm_ref.dtype)

    def tap(row, kh):                                            # row: (W, Cp)
        xp = jnp.concatenate([zrow, row, zrow], axis=0)          # (W+2, Cp)
        xk = jnp.concatenate(
            [xp[0:wout], xp[1:wout + 1], xp[2:wout + 2]], axis=1)  # (W, 3*Cp)
        return jnp.dot(xk, w_ref[kh], preferred_element_type=jnp.float32)

    acc = tap(xm_ref[0, 0], 1)
    acc += jnp.where(j > 0, 1.0, 0.0) * tap(xt_ref[0, 0], 0)      # top zero-pad row
    acc += jnp.where(j < nh - 1, 1.0, 0.0) * tap(xb_ref[0, 0], 2)  # bottom pad row

    y = acc + b_ref[...]
    y_ref[...] = y.astype(y_ref.dtype)[None, None]
    st_ref[...] += jnp.concatenate(
        [jnp.sum(y, axis=0, keepdims=True),
         jnp.sum(y * y, axis=0, keepdims=True)], axis=0)[None]


def _make_gemm_kernel(nseg):
    """1x1 conv over `nseg` channel segments (avoids decoder concat copies)."""

    def kernel(*refs):
        xs = refs[:nseg]
        ws = refs[nseg:2 * nseg]
        b_ref = refs[2 * nseg]
        y_ref = refs[2 * nseg + 1]
        st_ref = refs[2 * nseg + 2]
        acc = jnp.dot(xs[0][...], ws[0][...], preferred_element_type=jnp.float32)
        for s in range(1, nseg):
            acc = acc + jnp.dot(xs[s][...], ws[s][...],
                                preferred_element_type=jnp.float32)
        y = acc + b_ref[...]
        y_ref[...] = y.astype(y_ref.dtype)
        st_ref[...] = jnp.concatenate(
            [jnp.sum(y, axis=0, keepdims=True),
             jnp.sum(y * y, axis=0, keepdims=True)], axis=0)[None]

    return kernel


def _affine_kernel(*refs, act, res_mode):
    """Folded BatchNorm apply (+ activation, + fused residual add)."""
    if res_mode is None:
        y_ref, sc_ref, sh_ref, o_ref = refs
        r_ref = None
    else:
        y_ref, r_ref, sc_ref, sh_ref, o_ref = refs
    v = y_ref[...].astype(jnp.float32) * sc_ref[...] + sh_ref[...]
    if res_mode == "pre":                       # attention: relu(g1 + x1)
        v = v + r_ref[...].astype(jnp.float32)
    if act == "relu":
        v = jnp.maximum(v, 0.0)
    elif act == "sigmoid":
        v = jax.nn.sigmoid(v)
    if res_mode == "post":                      # recurrent residual: x + relu(bn(.))
        v = v + r_ref[...].astype(jnp.float32)
    o_ref[...] = v.astype(o_ref.dtype)


def _gate_kernel(p_ref, x_ref, sc_ref, sh_ref, o_ref):
    """Attention gate: out = x * sigmoid(bn(psi))[:, 0:1] (lane 0 is the real channel)."""
    psi = p_ref[...].astype(jnp.float32) * sc_ref[...] + sh_ref[...]
    gate = jax.nn.sigmoid(psi[:, 0:1])
    o_ref[...] = (x_ref[...].astype(jnp.float32) * gate).astype(o_ref.dtype)


def _maxpool_kernel(x_ref, o_ref, *, cp):
    """2x2 stride-2 max pool: H pair in sublanes, W pair pre-folded into lane halves."""
    v = jnp.maximum(x_ref[0, 0], x_ref[0, 1])                    # (W/2, 2*cp)
    o_ref[...] = jnp.maximum(v[:, :cp], v[:, cp:])[None, None]


# ----------------------------------------------------------------------------
# memoized pallas_call builders (one Mosaic compile per unique shape)
# ----------------------------------------------------------------------------
@functools.lru_cache(maxsize=None)
def _conv3x3_call(n, h, w, cp, qp):
    # Weight has a constant index_map -> fetched once and resident across the grid.
    # TODO(synk): force pipeline_mode=pl.Buffered(1) for the resident weight on v7x
    # (64 MiB VMEM) once buffer_count=1 is universally accepted.
    # TODO(synk): per-(n, h-tile) stats blocks + an h-"parallel" axis would feed both
    # v7x TensorCores; kept h "arbitrary" here so the stats accumulator stays correct.
    return pl.pallas_call(
        _conv3x3_kernel,
        grid=(n, h),
        in_specs=[
            pl.BlockSpec((1, 1, w, cp),
                         lambda i, j: (i, jnp.maximum(j - 1, 0), 0, 0)),
            pl.BlockSpec((1, 1, w, cp), lambda i, j: (i, j, 0, 0)),
            pl.BlockSpec((1, 1, w, cp),
                         lambda i, j: (i, jnp.minimum(j + 1, h - 1), 0, 0)),
            pl.BlockSpec((3, 3 * cp, qp), lambda i, j: (0, 0, 0)),
            pl.BlockSpec((1, qp), lambda i, j: (0, 0)),
        ],
        out_specs=[
            pl.BlockSpec((1, 1, w, qp), lambda i, j: (i, j, 0, 0)),
            pl.BlockSpec((1, 2, qp), lambda i, j: (i, 0, 0)),
        ],
        out_shape=[
            jax.ShapeDtypeStruct((n, h, w, qp), jnp.bfloat16),
            jax.ShapeDtypeStruct((n, 2, qp), jnp.float32),
        ],
        compiler_params=pltpu.CompilerParams(
            dimension_semantics=("parallel", "arbitrary"),
            vmem_limit_bytes=VMEM_LIMIT),
    )


@functools.lru_cache(maxsize=None)
def _gemm_call(m, kps, qp, out_dtype):
    tm = _pick_tile(m, max(qp, max(kps)))
    nt = m // tm
    in_specs = ([pl.BlockSpec((tm, k), lambda i: (i, 0)) for k in kps]
                + [pl.BlockSpec((k, qp), lambda i: (0, 0)) for k in kps]
                + [pl.BlockSpec((1, qp), lambda i: (0, 0))])
    return pl.pallas_call(
        _make_gemm_kernel(len(kps)),
        grid=(nt,),
        in_specs=in_specs,
        out_specs=[pl.BlockSpec((tm, qp), lambda i: (i, 0)),
                   pl.BlockSpec((1, 2, qp), lambda i: (i, 0, 0))],
        out_shape=[jax.ShapeDtypeStruct((m, qp), out_dtype),
                   jax.ShapeDtypeStruct((nt, 2, qp), jnp.float32)],
        compiler_params=pltpu.CompilerParams(
            dimension_semantics=("parallel",), vmem_limit_bytes=VMEM_LIMIT),
    )


@functools.lru_cache(maxsize=None)
def _affine_call(m, cp, act, res_mode):
    tm = _pick_tile(m, cp)
    in_specs = [pl.BlockSpec((tm, cp), lambda i: (i, 0))]
    if res_mode is not None:
        in_specs.append(pl.BlockSpec((tm, cp), lambda i: (i, 0)))
    in_specs += [pl.BlockSpec((1, cp), lambda i: (0, 0)),
                 pl.BlockSpec((1, cp), lambda i: (0, 0))]
    return pl.pallas_call(
        functools.partial(_affine_kernel, act=act, res_mode=res_mode),
        grid=(m // tm,),
        in_specs=in_specs,
        out_specs=pl.BlockSpec((tm, cp), lambda i: (i, 0)),
        out_shape=jax.ShapeDtypeStruct((m, cp), jnp.bfloat16),
        compiler_params=pltpu.CompilerParams(
            dimension_semantics=("parallel",), vmem_limit_bytes=VMEM_LIMIT),
    )


@functools.lru_cache(maxsize=None)
def _gate_call(m, qp, ca):
    tm = _pick_tile(m, max(qp, ca))
    return pl.pallas_call(
        _gate_kernel,
        grid=(m // tm,),
        in_specs=[pl.BlockSpec((tm, qp), lambda i: (i, 0)),
                  pl.BlockSpec((tm, ca), lambda i: (i, 0)),
                  pl.BlockSpec((1, qp), lambda i: (0, 0)),
                  pl.BlockSpec((1, qp), lambda i: (0, 0))],
        out_specs=pl.BlockSpec((tm, ca), lambda i: (i, 0)),
        out_shape=jax.ShapeDtypeStruct((m, ca), jnp.bfloat16),
        compiler_params=pltpu.CompilerParams(
            dimension_semantics=("parallel",), vmem_limit_bytes=VMEM_LIMIT),
    )


@functools.lru_cache(maxsize=None)
def _maxpool_call(n, h2, w2, cp):
    return pl.pallas_call(
        functools.partial(_maxpool_kernel, cp=cp),
        grid=(n, h2),
        in_specs=[pl.BlockSpec((1, 2, w2, 2 * cp), lambda i, j: (i, j, 0, 0))],
        out_specs=pl.BlockSpec((1, 1, w2, cp), lambda i, j: (i, j, 0, 0)),
        out_shape=jax.ShapeDtypeStruct((n, h2, w2, cp), jnp.bfloat16),
        compiler_params=pltpu.CompilerParams(
            dimension_semantics=("parallel", "parallel"),
            vmem_limit_bytes=VMEM_LIMIT),
    )


# ----------------------------------------------------------------------------
# layer wrappers (NHWC, channel-padded, bf16 activations)
# ----------------------------------------------------------------------------
def _bn_scale_shift(sums, count, gamma, beta):
    mean = sums[0] / count
    var = jnp.maximum(sums[1] / count - mean * mean, 0.0)   # guard f32 cancellation
    inv = lax.rsqrt(var + EPS)
    scale = gamma * inv
    shift = beta - mean * scale
    return scale[None, :], shift[None, :]


def conv3x3_block(x, p, act="relu", residual=None):
    """3x3 conv + bias -> BatchNorm (batch stats) -> act [-> + residual]."""
    n, h, w, cp = x.shape
    qp = p["w"].shape[-1]
    y, st = _conv3x3_call(n, h, w, cp, qp)(x, x, x, p["w"], p["b"])
    m = n * h * w
    scale, shift = _bn_scale_shift(jnp.sum(st, axis=0), float(m),
                                   p["gamma"], p["beta"])
    args = [y.reshape(m, qp)]
    res_mode = None
    if residual is not None:
        args.append(residual.reshape(m, qp))
        res_mode = "post"
    out = _affine_call(m, qp, act, res_mode)(*args, scale, shift)
    return out.reshape(n, h, w, qp)


def _run_gemm(xs, p, out_dtype=jnp.bfloat16):
    n, h, w = xs[0].shape[:3]
    m = n * h * w
    kps = tuple(int(t.shape[-1]) for t in xs)
    qp = int(p["b"].shape[-1])
    y, st = _gemm_call(m, kps, qp, out_dtype)(
        *[t.reshape(m, k) for t, k in zip(xs, kps)], *p["ws"], p["b"])
    return y, st, (n, h, w), m, qp


def conv1x1(xs, p, out_dtype=jnp.bfloat16):
    """Plain 1x1 conv (no BN) over one or more channel segments (fused concat)."""
    y, _, (n, h, w), _, qp = _run_gemm(xs, p, out_dtype)
    return y.reshape(n, h, w, qp)


def conv1x1_bn(xs, p, act=None, residual=None, res_mode="pre"):
    y, st, (n, h, w), m, qp = _run_gemm(xs, p)
    scale, shift = _bn_scale_shift(jnp.sum(st, axis=0), float(m),
                                   p["gamma"], p["beta"])
    args = [y]
    rm = None
    if residual is not None:
        args.append(residual.reshape(m, qp))
        rm = res_mode
    out = _affine_call(m, qp, act, rm)(*args, scale, shift)
    return out.reshape(n, h, w, qp)


def maxpool2x2(x):
    n, h, w, cp = x.shape
    return _maxpool_call(n, h // 2, w // 2, cp)(x.reshape(n, h, w // 2, 2 * cp))


def upsample_nearest2(x):
    # TODO(synk): fold the nearest-x2 upsample into the following up_conv's index_map
    # (source row j//2 + in-kernel column duplication) to avoid the 4x intermediate.
    return jnp.repeat(jnp.repeat(x, 2, axis=1), 2, axis=2)


# ----------------------------------------------------------------------------
# parameter construction / packing (PyTorch layouts -> padded, lane-dense layouts)
# ----------------------------------------------------------------------------
def pack_conv3x3_bn(w, b, gamma, beta):
    cout, cin = w.shape[0], w.shape[1]
    cp, qp = _pad128(cin), _pad128(cout)
    wt = jnp.transpose(w, (2, 3, 1, 0))                          # (kh, kw, cin, cout)
    wp = jnp.zeros((3, 3, cp, qp), jnp.float32).at[:, :, :cin, :cout].set(wt)
    wp = wp.reshape(3, 3 * cp, qp).astype(jnp.bfloat16)          # kw-major K packing
    return dict(w=wp, b=_pad_vec(b, qp)[None, :],
                gamma=_pad_vec(gamma, qp), beta=_pad_vec(beta, qp))


def make_conv3x3_bn(key, cin, cout):
    k1, k2 = jax.random.split(key)
    bound = 1.0 / math.sqrt(cin * 9)
    return pack_conv3x3_bn(_uniform(k1, (cout, cin, 3, 3), bound),
                           _uniform(k2, (cout,), bound),
                           jnp.ones((cout,), jnp.float32),
                           jnp.zeros((cout,), jnp.float32))


def make_conv1x1(key, cin_segs, cout, bn=False):
    cin = sum(cin_segs)
    k1, k2 = jax.random.split(key)
    bound = 1.0 / math.sqrt(cin)
    w = _uniform(k1, (cout, cin), bound)
    b = _uniform(k2, (cout,), bound)
    qp = _pad128(cout)
    ws, off = [], 0
    for c in cin_segs:                     # one padded weight slab per concat segment
        cp = _pad128(c)
        wp = jnp.zeros((cp, qp), jnp.float32).at[:c, :cout].set(
            jnp.transpose(w[:, off:off + c]))
        ws.append(wp.astype(jnp.bfloat16))
        off += c
    p = dict(ws=ws, b=_pad_vec(b, qp)[None, :])
    if bn:
        p["gamma"] = _pad_vec(jnp.ones((cout,), jnp.float32), qp)
        p["beta"] = jnp.zeros((qp,), jnp.float32)
    return p


def make_rrcnn(key, cin_segs, cout):
    k1, k2, k3 = jax.random.split(key, 3)
    return dict(c1=make_conv1x1(k1, cin_segs, cout, bn=False),
                r1=make_conv3x3_bn(k2, cout, cout),
                r2=make_conv3x3_bn(k3, cout, cout))


def make_attention(key, fg, fl, fint):
    k1, k2, k3 = jax.random.split(key, 3)
    return dict(wg=make_conv1x1(k1, (fg,), fint, bn=True),
                wx=make_conv1x1(k2, (fl,), fint, bn=True),
                psi=make_conv1x1(k3, (fint,), 1, bn=True))


def make_r2attunet_params(key, img_ch=3, output_ch=1, base=64):
    ch = [base, base * 2, base * 4, base * 8, base * 16]
    ks = iter(jax.random.split(key, 18))
    P = {}
    P["RRCNN1"] = make_rrcnn(next(ks), (img_ch,), ch[0])
    P["RRCNN2"] = make_rrcnn(next(ks), (ch[0],), ch[1])
    P["RRCNN3"] = make_rrcnn(next(ks), (ch[1],), ch[2])
    P["RRCNN4"] = make_rrcnn(next(ks), (ch[2],), ch[3])
    P["RRCNN5"] = make_rrcnn(next(ks), (ch[3],), ch[4])
    P["Up5"] = make_conv3x3_bn(next(ks), ch[4], ch[3])
    P["Att5"] = make_attention(next(ks), ch[3], ch[3], ch[2])
    P["Up_RRCNN5"] = make_rrcnn(next(ks), (ch[3], ch[3]), ch[3])
    P["Up4"] = make_conv3x3_bn(next(ks), ch[3], ch[2])
    P["Att4"] = make_attention(next(ks), ch[2], ch[2], ch[1])
    P["Up_RRCNN4"] = make_rrcnn(next(ks), (ch[2], ch[2]), ch[2])
    P["Up3"] = make_conv3x3_bn(next(ks), ch[2], ch[1])
    P["Att3"] = make_attention(next(ks), ch[1], ch[1], ch[0])
    P["Up_RRCNN3"] = make_rrcnn(next(ks), (ch[1], ch[1]), ch[1])
    P["Up2"] = make_conv3x3_bn(next(ks), ch[1], ch[0])
    P["Att2"] = make_attention(next(ks), ch[0], ch[0], max(base // 2, 1))
    P["Up_RRCNN2"] = make_rrcnn(next(ks), (ch[0], ch[0]), ch[0])
    P["Conv_1x1"] = make_conv1x1(next(ks), (ch[0],), output_ch, bn=False)
    return P


# ----------------------------------------------------------------------------
# module forward functions (mirror the PyTorch graph, t=2)
# ----------------------------------------------------------------------------
def recurrent_forward(x, p, final_residual=None):
    # t=2 unrolled: x1 = cb(x); x1 = cb(x + x1); x1 = cb(x + x1)
    # The "x + relu(bn(.))" residual is fused into the BN-apply pass.
    h = conv3x3_block(x, p, act="relu", residual=x)      # = x + relu(bn(conv(x)))
    h = conv3x3_block(h, p, act="relu", residual=x)      # = x + relu(bn(conv(x+.)))
    return conv3x3_block(h, p, act="relu", residual=final_residual)


def rrcnn_forward(xs, p):
    """xs: tuple of 1 or 2 NHWC segments (the torch channel-concat, unmaterialized)."""
    xc = conv1x1(xs, p["c1"])
    h = recurrent_forward(xc, p["r1"])
    return recurrent_forward(h, p["r2"], final_residual=xc)     # rrcnn skip fused


def upconv_forward(x, p):
    return conv3x3_block(upsample_nearest2(x), p, act="relu")


def attention_forward(g, x, p):
    g1 = conv1x1_bn((g,), p["wg"], act=None)
    s = conv1x1_bn((x,), p["wx"], act="relu", residual=g1, res_mode="pre")
    # psi 1x1 conv -> BN -> sigmoid -> x * psi, with BN+sigmoid+gate fused.
    y, st, (n, h, w), m, qp = _run_gemm((s,), p["psi"])
    scale, shift = _bn_scale_shift(jnp.sum(st, axis=0), float(m),
                                   p["psi"]["gamma"], p["psi"]["beta"])
    ca = x.shape[-1]
    out = _gate_call(m, qp, ca)(y, x.reshape(m, ca), scale, shift)
    return out.reshape(n, h, w, ca)


def r2attunet_forward(x_nchw, P, output_ch=1):
    n, c, h, w = x_nchw.shape
    cp = _pad128(c)
    x = jnp.zeros((n, h, w, cp), jnp.bfloat16).at[..., :c].set(
        jnp.transpose(x_nchw, (0, 2, 3, 1)).astype(jnp.bfloat16))

    x1 = rrcnn_forward((x,), P["RRCNN1"])
    x2 = rrcnn_forward((maxpool2x2(x1),), P["RRCNN2"])
    x3 = rrcnn_forward((maxpool2x2(x2),), P["RRCNN3"])
    x4 = rrcnn_forward((maxpool2x2(x3),), P["RRCNN4"])
    x5 = rrcnn_forward((maxpool2x2(x4),), P["RRCNN5"])

    d5 = upconv_forward(x5, P["Up5"])
    a4 = attention_forward(d5, x4, P["Att5"])
    d5 = rrcnn_forward((a4, d5), P["Up_RRCNN5"])    # concat fused into 2-seg GEMM

    d4 = upconv_forward(d5, P["Up4"])
    a3 = attention_forward(d4, x3, P["Att4"])
    d4 = rrcnn_forward((a3, d4), P["Up_RRCNN4"])

    d3 = upconv_forward(d4, P["Up3"])
    a2 = attention_forward(d3, x2, P["Att3"])
    d3 = rrcnn_forward((a2, d3), P["Up_RRCNN3"])

    d2 = upconv_forward(d3, P["Up2"])
    a1 = attention_forward(d2, x1, P["Att2"])
    d2 = rrcnn_forward((a1, d2), P["Up_RRCNN2"])

    d1 = conv1x1((d2,), P["Conv_1x1"], out_dtype=jnp.float32)
    return jnp.transpose(d1[..., :output_ch], (0, 3, 1, 2)).astype(jnp.float32)


# ----------------------------------------------------------------------------
# pure-JAX reference for the fused conv3x3 + BN(batch stats) + ReLU block
# ----------------------------------------------------------------------------
def _ref_conv3x3_bn_relu(x, w, b, gamma, beta):
    y = lax.conv_general_dilated(x, w, (1, 1), ((1, 1), (1, 1)),
                                 dimension_numbers=("NCHW", "OIHW", "NCHW"))
    y = y + b[None, :, None, None]
    mean = jnp.mean(y, axis=(0, 2, 3), keepdims=True)
    var = jnp.mean((y - mean) ** 2, axis=(0, 2, 3), keepdims=True)
    y = (gamma[None, :, None, None] * (y - mean) * lax.rsqrt(var + EPS)
         + beta[None, :, None, None])
    return jnp.maximum(y, 0.0)


if __name__ == "__main__":
    key = jax.random.PRNGKey(0)
    kp, kx, kt = jax.random.split(key, 3)

    IMG_CH, OUT_CH = 3, 1
    BASE = 8          # real R2AttU_Net uses 64; reduced for a fast small-shape demo
    N, H, W = 2, 16, 16

    # --- unit check: fused 3x3 conv + BN (batch stats) + ReLU vs pure-JAX reference ---
    k1, k2, k3 = jax.random.split(kt, 3)
    cin = cout = BASE
    bound = 1.0 / math.sqrt(cin * 9)
    w_raw = _uniform(k1, (cout, cin, 3, 3), bound)
    b_raw = _uniform(k2, (cout,), bound)
    gamma = 1.0 + 0.1 * jnp.arange(cout, dtype=jnp.float32)
    beta = 0.05 * jnp.arange(cout, dtype=jnp.float32)
    blk = pack_conv3x3_bn(w_raw, b_raw, gamma, beta)
    xt = jax.random.normal(k3, (N, cin, H, W), jnp.float32)
    xt_p = jnp.zeros((N, H, W, _pad128(cin)), jnp.bfloat16).at[..., :cin].set(
        jnp.transpose(xt, (0, 2, 3, 1)).astype(jnp.bfloat16))
    got = conv3x3_block(xt_p, blk, act="relu")[..., :cout].astype(jnp.float32)
    got = jnp.transpose(got, (0, 3, 1, 2))
    ref = _ref_conv3x3_bn_relu(xt, w_raw, b_raw, gamma, beta)
    np.testing.assert_allclose(np.asarray(got), np.asarray(ref), atol=6e-2, rtol=6e-2)

    # --- full R2AttU_Net forward ---
    params = make_r2attunet_params(kp, img_ch=IMG_CH, output_ch=OUT_CH, base=BASE)
    x = jax.random.normal(kx, (N, IMG_CH, H, W), jnp.float32)
    fwd = jax.jit(r2attunet_forward, static_argnums=(2,))
    out = jax.block_until_ready(fwd(x, params, OUT_CH))

    assert out.shape == (N, OUT_CH, H, W), out.shape
    assert bool(jnp.all(jnp.isfinite(out)))
    print("KERNEL_OK")
</pallas_src>

<mosaic_0001>
module attributes {stable_mosaic.version = 11 : i64} {
  func.func @_conv3x3_kernel(%arg0: i32, %arg1: i32, %arg2: memref<1x1x16x128xbf16, #tpu.memory_space<vmem>>, %arg3: memref<1x1x16x128xbf16, #tpu.memory_space<vmem>>, %arg4: memref<1x1x16x128xbf16, #tpu.memory_space<vmem>>, %arg5: memref<3x384x128xbf16, #tpu.memory_space<vmem>>, %arg6: memref<1x128xf32, #tpu.memory_space<vmem>>, %arg7: memref<1x1x16x128xbf16, #tpu.memory_space<vmem>>, %arg8: memref<1x2x128xf32, #tpu.memory_space<vmem>>) attributes {dimension_semantics = [#tpu.dimension_semantics<parallel>, #tpu.dimension_semantics<arbitrary>], iteration_bounds = array<i64: 2, 16>, scalar_prefetch = 0 : i64, scratch_operands = 0 : i64, tpu.core_type = #tpu.core_type<tc>, window_params = [{transform_indices = @transform_0, window_bounds = array<i64: 1, 1, 16, 128>}, {transform_indices = @transform_1, window_bounds = array<i64: 1, 1, 16, 128>}, {transform_indices = @transform_2, window_bounds = array<i64: 1, 1, 16, 128>}, {pipeline_mode = #tpu.pipeline_mode<synchronous>, transform_indices = @transform_3, window_bounds = array<i64: 3, 384, 128>}, {pipeline_mode = #tpu.pipeline_mode<synchronous>, transform_indices = @transform_4, window_bounds = array<i64: 1, 128>}, {transform_indices = @transform_5, window_bounds = array<i64: 1, 1, 16, 128>}, {transform_indices = @transform_6, window_bounds = array<i64: 1, 2, 128>}]} {
    %c0_i32 = arith.constant 0 : i32
    %0 = arith.cmpi eq, %arg1, %c0_i32 : i32
    %1 = arith.extui %0 : i1 to i32
    %c0_i32_0 = arith.constant 0 : i32
    %2 = arith.cmpi ne, %1, %c0_i32_0 : i32
    scf.if %2 {
      %cst_41 = arith.constant 0.000000e+00 : f32
      %60 = vector.broadcast %cst_41 : f32 to vector<1x2x128xf32>
      %c0_42 = arith.constant 0 : index
      %c0_43 = arith.constant 0 : index
      %c0_44 = arith.constant 0 : index
      %61 = vector.load %arg8[%c0_42, %c0_43, %c0_44] : memref<1x2x128xf32, #tpu.memory_space<vmem>>, vector<1x2x128xf32>
      tpu.vector_store %arg8[%c0_42, %c0_43, %c0_44], %60 {strides = array<i32>} : memref<1x2x128xf32, #tpu.memory_space<vmem>>, vector<1x2x128xf32>,
    } else {
    }
    %cst = arith.constant 0.000000e+00 : bf16
    %3 = vector.broadcast %cst : bf16 to vector<1x128xbf16>
    %c0 = arith.constant 0 : index
    %c0_1 = arith.constant 0 : index
    %c0_2 = arith.constant 0 : index
    %c0_3 = arith.constant 0 : index
    %4 = vector.load %arg3[%c0, %c0_1, %c0_2, %c0_3] : memref<1x1x16x128xbf16, #tpu.memory_space<vmem>>, vector<1x1x16x128xbf16>
    %5 = vector.shape_cast %4 : vector<1x1x16x128xbf16> to vector<16x128xbf16>
    %6 = tpu.concatenate %3, %5, %3 in 0 : vector<1x128xbf16>, vector<16x128xbf16>, vector<1x128xbf16> -> vector<18x128xbf16>
    %7 = vector.extract_strided_slice %6 {offsets = [0, 0], sizes = [16, 128], strides = [1, 1]} : vector<18x128xbf16> to vector<16x128xbf16>
    %8 = vector.extract_strided_slice %6 {offsets = [1, 0], sizes = [16, 128], strides = [1, 1]} : vector<18x128xbf16> to vector<16x128xbf16>
    %9 = vector.extract_strided_slice %6 {offsets = [2, 0], sizes = [16, 128], strides = [1, 1]} : vector<18x128xbf16> to vector<16x128xbf16>
    %10 = tpu.concatenate %7, %8, %9 in 1 : vector<16x128xbf16>, vector<16x128xbf16>, vector<16x128xbf16> -> vector<16x384xbf16>
    %c1 = arith.constant 1 : index
    %c0_4 = arith.constant 0 : index
    %c0_5 = arith.constant 0 : index
    %11 = vector.load %arg5[%c1, %c0_4, %c0_5] : memref<3x384x128xbf16, #tpu.memory_space<vmem>>, vector<1x384x128xbf16>
    %12 = vector.shape_cast %11 : vector<1x384x128xbf16> to vector<384x128xbf16>
    %cst_6 = arith.constant dense<0.000000e+00> : vector<16x128xf32>
    %13 = tpu.matmul %10, %12, %cst_6 {dimension_numbers = #tpu.dot_dimension_numbers<[1], [0], [0], [1], [0, 0, 1, 1], [], []>} : vector<16x384xbf16>, vector<384x128xbf16>, vector<16x128xf32> -> vector<16x128xf32>
    %c0_i32_7 = arith.constant 0 : i32
    %14 = arith.cmpi sgt, %arg1, %c0_i32_7 : i32
    %cst_8 = arith.constant 1.000000e+00 : f32
    %cst_9 = arith.constant 0.000000e+00 : f32
    %15 = arith.select %14, %cst_8, %cst_9 : f32
    %c0_10 = arith.constant 0 : index
    %c0_11 = arith.constant 0 : index
    %c0_12 = arith.constant 0 : index
    %c0_13 = arith.constant 0 : index
    %16 = vector.load %arg2[%c0_10, %c0_11, %c0_12, %c0_13] : memref<1x1x16x128xbf16, #tpu.memory_space<vmem>>, vector<1x1x16x128xbf16>
    %17 = vector.shape_cast %16 : vector<1x1x16x128xbf16> to vector<16x128xbf16>
    %18 = tpu.concatenate %3, %17, %3 in 0 : vector<1x128xbf16>, vector<16x128xbf16>, vector<1x128xbf16> -> vector<18x128xbf16>
    %19 = vector.extract_strided_slice %18 {offsets = [0, 0], sizes = [16, 128], strides = [1, 1]} : vector<18x128xbf16> to vector<16x128xbf16>
    %20 = vector.extract_strided_slice %18 {offsets = [1, 0], sizes = [16, 128], strides = [1, 1]} : vector<18x128xbf16> to vector<16x128xbf16>
    %21 = vector.extract_strided_slice %18 {offsets = [2, 0], sizes = [16, 128], strides = [1, 1]} : vector<18x128xbf16> to vector<16x128xbf16>
    %22 = tpu.concatenate %19, %20, %21 in 1 : vector<16x128xbf16>, vector<16x128xbf16>, vector<16x128xbf16> -> vector<16x384xbf16>
    %c0_14 = arith.constant 0 : index
    %c0_15 = arith.constant 0 : index
    %c0_16 = arith.constant 0 : index
    %23 = vector.load %arg5[%c0_14, %c0_15, %c0_16] : memref<3x384x128xbf16, #tpu.memory_space<vmem>>, vector<1x384x128xbf16>
    %24 = vector.shape_cast %23 : vector<1x384x128xbf16> to vector<384x128xbf16>
    %cst_17 = arith.constant dense<0.000000e+00> : vector<16x128xf32>
    %25 = tpu.matmul %22, %24, %cst_17 {dimension_numbers = #tpu.dot_dimension_numbers<[1], [0], [0], [1], [0, 0, 1, 1], [], []>} : vector<16x384xbf16>, vector<384x128xbf16>, vector<16x128xf32> -> vector<16x128xf32>
    %26 = vector.broadcast %15 : f32 to vector<16x128xf32>
    %27 = arith.mulf %26, %25 : vector<16x128xf32>
    %28 = arith.addf %13, %27 : vector<16x128xf32>
    %c15_i32 = arith.constant 15 : i32
    %29 = arith.cmpi slt, %arg1, %c15_i32 : i32
    %cst_18 = arith.constant 1.000000e+00 : f32
    %cst_19 = arith.constant 0.000000e+00 : f32
    %30 = arith.select %29, %cst_18, %cst_19 : f32
    %c0_20 = arith.constant 0 : index
    %c0_21 = arith.constant 0 : index
    %c0_22 = arith.constant 0 : index
    %c0_23 = arith.constant 0 : index
    %31 = vector.load %arg4[%c0_20, %c0_21, %c0_22, %c0_23] : memref<1x1x16x128xbf16, #tpu.memory_space<vmem>>, vector<1x1x16x128xbf16>
    %32 = vector.shape_cast %31 : vector<1x1x16x128xbf16> to vector<16x128xbf16>
    %33 = tpu.concatenate %3, %32, %3 in 0 : vector<1x128xbf16>, vector<16x128xbf16>, vector<1x128xbf16> -> vector<18x128xbf16>
    %34 = vector.extract_strided_slice %33 {offsets = [0, 0], sizes = [16, 128], strides = [1, 1]} : vector<18x128xbf16> to vector<16x128xbf16>
    %35 = vector.extract_strided_slice %33 {offsets = [1, 0], sizes = [16, 128], strides = [1, 1]} : vector<18x128xbf16> to vector<16x128xbf16>
    %36 = vector.extract_strided_slice %33 {offsets = [2, 0], sizes = [16, 128], strides = [1, 1]} : vector<18x128xbf16> to vector<16x128xbf16>
    %37 = tpu.concatenate %34, %35, %36 in 1 : vector<16x128xbf16>, vector<16x128xbf16>, vector<16x128xbf16> -> vector<16x384xbf16>
    %c2 = arith.constant 2 : index
    %c0_24 = arith.constant 0 : index
    %c0_25 = arith.constant 0 : index
    %38 = vector.load %arg5[%c2, %c0_24, %c0_25] : memref<3x384x128xbf16, #tpu.memory_space<vmem>>, vector<1x384x128xbf16>
    %39 = vector.shape_cast %38 : vector<1x384x128xbf16> to vector<384x128xbf16>
    %cst_26 = arith.constant dense<0.000000e+00> : vector<16x128xf32>
    %40 = tpu.matmul %37, %39, %cst_26 {dimension_numbers = #tpu.dot_dimension_numbers<[1], [0], [0], [1], [0, 0, 1, 1], [], []>} : vector<16x384xbf16>, vector<384x128xbf16>, vector<16x128xf32> -> vector<16x128xf32>
    %41 = vector.broadcast %30 : f32 to vector<16x128xf32>
    %42 = arith.mulf %41, %40 : vector<16x128xf32>
    %43 = arith.addf %28, %42 : vector<16x128xf32>
    %c0_27 = arith.constant 0 : index
    %c0_28 = arith.constant 0 : index
    %44 = vector.load %arg6[%c0_27, %c0_28] : memref<1x128xf32, #tpu.memory_space<vmem>>, vector<1x128xf32>
    %45 = vector.broadcast %44 : vector<1x128xf32> to vector<16x128xf32>
    %46 = arith.addf %43, %45 : vector<16x128xf32>
    %47 = arith.truncf %46 : vector<16x128xf32> to vector<16x128xbf16>
    %48 = vector.shape_cast %47 : vector<16x128xbf16> to vector<1x1x16x128xbf16>
    %c0_29 = arith.constant 0 : index
    %c0_30 = arith.constant 0 : index
    %c0_31 = arith.constant 0 : index
    %c0_32 = arith.constant 0 : index
    %49 = vector.load %arg7[%c0_29, %c0_30, %c0_31, %c0_32] : memref<1x1x16x128xbf16, #tpu.memory_space<vmem>>, vector<1x1x16x128xbf16>
    tpu.vector_store %arg7[%c0_29, %c0_30, %c0_31, %c0_32], %48 {strides = array<i32>} : memref<1x1x16x128xbf16, #tpu.memory_space<vmem>>, vector<1x1x16x128xbf16>,
    %c0_33 = arith.constant 0 : index
    %c0_34 = arith.constant 0 : index
    %c0_35 = arith.constant 0 : index
    %50 = vector.load %arg8[%c0_33, %c0_34, %c0_35] : memref<1x2x128xf32, #tpu.memory_space<vmem>>, vector<1x2x128xf32>
    %cst_36 = arith.constant dense<0.000000e+00> : vector<128xf32>
    %51 = vector.multi_reduction <add>, %46, %cst_36 [0] : vector<16x128xf32> to vector<128xf32>
    %52 = vector.shape_cast %51 : vector<128xf32> to vector<1x128xf32>
    %53 = arith.mulf %46, %46 : vector<16x128xf32>
    %cst_37 = arith.constant dense<0.000000e+00> : vector<128xf32>
    %54 = vector.multi_reduction <add>, %53, %cst_37 [0] : vector<16x128xf32> to vector<128xf32>
    %55 = vector.shape_cast %54 : vector<128xf32> to vector<1x128xf32>
    %56 = tpu.concatenate %52, %55 in 0 : vector<1x128xf32>, vector<1x128xf32> -> vector<2x128xf32>
    %57 = vector.shape_cast %56 : vector<2x128xf32> to vector<1x2x128xf32>
    %58 = arith.addf %50, %57 : vector<1x2x128xf32>
    %c0_38 = arith.constant 0 : index
    %c0_39 = arith.constant 0 : index
    %c0_40 = arith.constant 0 : index
    %59 = vector.load %arg8[%c0_38, %c0_39, %c0_40] : memref<1x2x128xf32, #tpu.memory_space<vmem>>, vector<1x2x128xf32>
    tpu.vector_store %arg8[%c0_38, %c0_39, %c0_40], %58 {strides = array<i32>} : memref<1x2x128xf32, #tpu.memory_space<vmem>>, vector<1x2x128xf32>,
    return
  }
  func.func @transform_0(%arg0: i32, %arg1: i32) -> (i32, i32, i32, i32) {
    %c1_i32 = arith.constant 1 : i32
    %0 = arith.subi %arg1, %c1_i32 : i32
    %c0_i32 = arith.constant 0 : i32
    %1 = arith.maxsi %0, %c0_i32 : i32
    %c0_i32_0 = arith.constant 0 : i32
    %c0_i32_1 = arith.constant 0 : i32
    %c0_i32_2 = arith.constant 0 : i32
    return %arg0, %1, %c0_i32_0, %c0_i32_1 : i32, i32, i32, i32
  }
  func.func @transform_1(%arg0: i32, %arg1: i32) -> (i32, i32, i32, i32) {
    %c0_i32 = arith.constant 0 : i32
    %c0_i32_0 = arith.constant 0 : i32
    %c0_i32_1 = arith.constant 0 : i32
    return %arg0, %arg1, %c0_i32, %c0_i32_0 : i32, i32, i32, i32
  }
  func.func @transform_2(%arg0: i32, %arg1: i32) -> (i32, i32, i32, i32) {
    %c1_i32 = arith.constant 1 : i32
    %0 = arith.addi %arg1, %c1_i32 : i32
    %c15_i32 = arith.constant 15 : i32
    %1 = arith.minsi %0, %c15_i32 : i32
    %c0_i32 = arith.constant 0 : i32
    %c0_i32_0 = arith.constant 0 : i32
    %c0_i32_1 = arith.constant 0 : i32
    return %arg0, %1, %c0_i32, %c0_i32_0 : i32, i32, i32, i32
  }
  func.func @transform_3(%arg0: i32, %arg1: i32) -> (i32, i32, i32) {
    %c0_i32 = arith.constant 0 : i32
    %c0_i32_0 = arith.constant 0 : i32
    %c0_i32_1 = arith.constant 0 : i32
    %c0_i32_2 = arith.constant 0 : i32
    return %c0_i32, %c0_i32_0, %c0_i32_1 : i32, i32, i32
  }
  func.func @transform_4(%arg0: i32, %arg1: i32) -> (i32, i32) {
    %c0_i32 = arith.constant 0 : i32
    %c0_i32_0 = arith.constant 0 : i32
    %c0_i32_1 = arith.constant 0 : i32
    return %c0_i32, %c0_i32_0 : i32, i32
  }
  func.func @transform_5(%arg0: i32, %arg1: i32) -> (i32, i32, i32, i32) {
    %c0_i32 = arith.constant 0 : i32
    %c0_i32_0 = arith.constant 0 : i32
    %c0_i32_1 = arith.constant 0 : i32
    return %arg0, %arg1, %c0_i32, %c0_i32_0 : i32, i32, i32, i32
  }
  func.func @transform_6(%arg0: i32, %arg1: i32) -> (i32, i32, i32) {
    %c0_i32 = arith.constant 0 : i32
    %c0_i32_0 = arith.constant 0 : i32
    %c0_i32_1 = arith.constant 0 : i32
    return %arg0, %c0_i32, %c0_i32_0 : i32, i32, i32
  }
}

</mosaic_0001>

<bundles_post_ra>
// kernel: tpu_custom_call.1
= control target key start
LH: loop header
LB: loop body
LE: loop exit
PB: predicated region body
PF: predicated region fallthrough
CT: control target
= control target key end

     0   :  { %s3195_s0 = inlined_call_operand.hbm [shape: bf16[2,16,16,128], index: 0, kind: input, shape index: {}]   ;;  %s3196_s1 = inlined_call_operand.hbm [shape: bf16[2,16,16,128], index: 1, kind: input, shape index: {}]   ;;  %s3197_s2 = inlined_call_operand.hbm [shape: bf16[2,16,16,128], index: 2, kind: input, shape index: {}]   ;;  %s3198_s3 = inlined_call_operand.hbm [shape: bf16[3,384,128], index: 3, kind: input, shape index: {}]   ;;  %s3199_s4 = inlined_call_operand.vmem [shape: f32[1,128], index: 4, kind: input, shape index: {}]   ;;  %s3200_s5 = inlined_call_operand.hbm [shape: bf16[2,16,16,128], index: 5, kind: output, shape index: {0}]   ;;  %s3201_s6 = inlined_call_operand.hbm [shape: f32[2,2,128], index: 6, kind: output, shape index: {1}]  }
   0x1   :  { %3246 = sst [smem:[#allocation44_spill]] %s3195_s0 }
   0x2   :  { %3247 = sst [smem:[#allocation45_spill]] %s3196_s1 }
   0x3   :  { %3248 = sst [smem:[#allocation46_spill]] %s3197_s2 }
   0x4   :  { %3249 = sst [smem:[#allocation47_spill]] %s3198_s3 }
   0x5   :  { %3250 = sst [smem:[#allocation48_spill]] %s3199_s4 }
   0x6   :  { %3251 = sst [smem:[#allocation49_spill]] %s3200_s5 }
   0x7   :  { %3252 = sst [smem:[#allocation50_spill]] %s3201_s6 }
   0x8   :  { %12 = vsyncpa [#allocation3], 0 }
   0x9   :  { %14 = vsyncpa [#allocation3 + $0x1], 0 }
   0xa   :  { %15 = vsyncpa [#allocation6], 0 }
   0xb   :  { %17 = vsyncpa [#allocation6 + $0x1], 0 }
   0xc   :  { %18 = vsyncpa [#allocation9], 0 }
   0xd   :  { %19 = vsyncpa [#allocation4], 0 }
   0xe   :  { %21 = vsyncpa [#allocation4 + $0x1], 0 }
   0xf   :  { %22 = vsyncpa [#allocation12], 0 }
  0x10   :  { %24 = vsyncpa [#allocation12 + $0x1], 0  ;;  %s2550_s21 = smov 0   ;;  %s2552_s22 = smov 0  }
  0x11   :  { %s2554_s23 = smov 0   ;;  %s2556_s24 = smov 0  }
  0x12   :  { %s2558_s25 = smov 0   ;;  %s2560_s26 = smov 0  }
  0x13   :  { %s2562_s27 = smov 0   ;;  %s2564_s28 = smov 0  }
  0x14   :  { %s2566_s29 = smov 0   ;;  %s2568_s30 = smov 0  }
  0x15   :  { %s2570_s7 = smov 0   ;;  %s2572_s8 = smov 0  }
  0x16   :  { %s2574_s9 = smov 0   ;;  %s2576_s10 = smov 0  }
  0x17   :  { %s2578_s11 = smov 0   ;;  %s2580_s12 = smov 0  }
  0x18   :  { %s2582_s13 = smov 0  }
  0x19 LB: > { %3253 = sst [smem:[#allocation19_spill]] %s2436_s21  ;;  %s1637_s14 = sadd.s32 4294967294, %s2500_s13   ;;  %s2500_s13 = sphi %s2582_s13, %s30_s13   ;;  %s2496_s12 = sphi %s2580_s12, %s3363_s12   ;;  %s2492_s11 = sphi %s2578_s11, %s3354_s11   ;;  %s2488_s10 = sphi %s2576_s10, %s3353_s10   ;;  %s2484_s9 = sphi %s2574_s9, %s3352_s9   ;;  %s2480_s8 = sphi %s2572_s8, %s3351_s8   ;;  %s2476_s7 = sphi %s2570_s7, %s3362_s7   ;;  %s2472_s30 = sphi %s2568_s30, %s3361_s30   ;;  %s2468_s29 = sphi %s2566_s29, %s3360_s29   ;;  %s2464_s28 = sphi %s2564_s28, %s3359_s28   ;;  %s2460_s27 = sphi %s2562_s27, %s3358_s27   ;;  %s2456_s26 = sphi %s2560_s26, %s3357_s26   ;;  %s2452_s25 = sphi %s2558_s25, %s3347_s25   ;;  %s2448_s24 = sphi %s2556_s24, %s3346_s24   ;;  %s2444_s23 = sphi %s2554_s23, %s3345_s23   ;;  %s2440_s22 = sphi %s2552_s22, %s3344_s22   ;;  %s2436_s21 = sphi %s2550_s21, %s3343_s21  }
  0x1a   : > { %3254 = sst [smem:[#allocation20_spill]] %s2440_s22  ;;  %s2637_s15 = sadd.s32 1, %s2492_s11 }
  0x1b   : > { %3255 = sst [smem:[#allocation21_spill]] %s2444_s23  ;;  %p40_p0 = scmp.ge.s32.totalorder %s2637_s15, 16 }
  0x1c   : > { %3256 = sst [smem:[#allocation22_spill]] %s2448_s24  ;;  %s42_s16 = sadd.s32 1, %s2496_s12 }
  0x1d   : > { %3257 = sst [smem:[#allocation23_spill]] %s2452_s25  ;;  %p3215_p1 = scmp.eq.s32.totalorder %s2500_s13, 0 }
  0x1e   : > { %3258 = sst [smem:[#allocation24_spill]] %s2456_s26  ;;  %s85_s17 = sadd.s32 1, %s2468_s29 }
  0x1f   : > { %3259 = sst [smem:[#allocation25_spill]] %s2460_s27  ;;  %s3365_s16 = smov (!%p40_p0, %s42_s16), %s2496_s12 }
  0x20   : > { %3260 = sst [smem:[#allocation26_spill]] %s2468_s29  ;;  %p3216_p2 = scmp.ne.s32.totalorder %s2468_s29, %s2464_s28 }
  0x21   : > { %3261 = sst [smem:[#allocation27_spill]] %s2472_s30  ;;  %p44_p3 = scmp.ge.s32.totalorder %s3365_s16, 2 }
  0x22   : > { %3262 = sst [smem:[#allocation28_spill]] %s2480_s8  ;;  %p3217_p4 = scmp.ne.s32.totalorder %s2464_s28, %s2460_s27 }
  0x23   : > { %3263 = sst [smem:[#allocation29_spill]] %s2484_s9  ;;  %p2658_p5 = por %p3216_p2, %p3215_p1 }
  0x24   : > { %3264 = sst [smem:[#allocation30_spill]] %s2488_s10  ;;  %p2662_p6 = scmp.eq.s32.totalorder %s1637_s14, 31 }
  0x25   : > { %3265 = sst [smem:[#allocation31_spill]] %s2492_s11  ;;  %s3367_s16 = smov (%p44_p3, %s3365_s16), 0 }
  0x26   : > { %3266 = sst [smem:[#allocation32_spill]] %s2496_s12  ;;  %p2673_p7 = por %p2662_p6, %p3217_p4 }
  0x27   : > { %3267 = sst [smem:[#allocation33_spill]] %s2637_s15  ;;  %s2679_s4 = ssub.s32 %s2496_s12, %s3367_s16 }
  0x28   : > { %s2644_s18 = scalar_select %p40_p0, 0, %s2637_s15  }
  0x29   : > { %3271 = sst [smem:[#allocation35_spill]] %s3367_s16  ;;  %p3214_p10 = scmp.lt.s32.totalorder %s2500_s13, 32 }
  0x2a   : > { %3268 = sst [smem:[#allocation34_spill]] %s2644_s18  ;;  %s81_s19 = ssub.s32 %s2492_s11, %s2644_s18 }
  0x2b   : > { %s3272_s5 = scalar_select %p2673_p7, 1, 0 }
  0x2c   : > { %s82_s10 = sor.u32 %s81_s19, %s2679_s4  ;;  %s2685_s14 = sshll.u32 %s2496_s12, 5 }
  0x2d   : > { %3273 = sst [smem:[#allocation36_spill]] %s3272_s5  ;;  %p83_p9 = scmp.eq.s32.totalorder %s82_s10, 0 }
  0x2e   : > { %s294_s2 = sand.u32 1, %s2500_s13   ;;  %s296_s24 = sand.u32 1, %s2468_s29  }
  0x2f   : > { %s2688_s9 = scalar_select %p83_p9, %s2468_s29, %s85_s17  }
  0x30   : > { %s1648_s25 = sshll.u32 %s296_s24, 3  ;;  %s1649_s26 = sshll.u32 %s2492_s11, 1 }
  0x31   : > { %3274 = sst [smem:[#allocation37_spill]] %s2688_s9  ;;  %s304_s5 = sadd.s32 %s1649_s26, %s2685_s14 }
  0x32   : > { %s298_s16 = scalar_lea.vmem [#allocation5], %s1648_s25  ;;  %s1651_s0 = sshll.u32 %s304_s5, 6 }
  0x33   : > { %s307_s15 = sshll.u32 %s298_s16, 4  ;;  %s3275_s1 = sld [smem:[#allocation45_spill]]  ;;  %s2694_s15 = int_to_ptr.vmem [resolvable:$true] %s307_s15 }
  0x34   : > { %p2705_p11 = pnand %p3214_p10, %p2658_p5  ;;  %s2709_s5 = scalar_lea.sflag [#allocation6], %s294_s2 }
  0x36   : > { %p2170_p13 = pneg %p2705_p11 }
  0x39   : > { %s2699_s10 = scalar_lea.hbm %s3275_s1, %s1651_s0  ;;  %s2173_s30 = scalar_lea.hbm %s3275_s1, 4096 }
  0x3a   : > { %s2168_s25 = scalar_lea.hbm %s2699_s10, 128  ;;  %p2174_p5 = scmp.lt.u32.totalorder %s2699_s10, %s3275_s1 }
  0x3b   : > { %p2169_p12 = scmp.ne.s32.totalorder %s2699_s10, %s2168_s25  ;;  %p2175_p9 = scmp.lt.u32.totalorder %s2173_s30, %s2168_s25 }
  0x3c   : > { %p2177_p1 = scmp.lt.u32.totalorder %s2168_s25, %s2699_s10 }
  0x3d   : > { %p2171_p0 = pnand %p2170_p13, %p2169_p12  ;;  %p2176_p10 = por %p2175_p9, %p2174_p5 }
  0x3f   : > { %p2172_p3 = pneg %p2171_p0  ;;  %p2178_p8 = por %p2177_p1, %p2176_p10 }
  0x41   : > { %p2179_p2 = pnand %p2178_p8, %p2172_p3 }
  0x43   : > { %2182 = shalt.err (!%p2179_p2)
}
  0x44   : > { %s2183_s2 = scalar_lea.vmem %s2694_s15, 128  ;;  %s2502_s20 = smov [#allocation5]  }
  0x45   : > { %p2184_p12 = scmp.ne.s32.totalorder %s2694_s15, %s2183_s2  ;;  %s2188_s19 = sshll.u32 %s2502_s20, 4  ;;  %s2189_s19 = int_to_ptr.vmem [resolvable:$false] %s2188_s19 }
  0x46   : > { %s2190_s0 = scalar_lea.vmem %s2189_s19, 256  ;;  %p2191_p7 = scmp.lt.s32.totalorder %s2694_s15, %s2189_s19 }
  0x47   : > { %p2186_p0 = pnand %p2184_p12, %p2170_p13  ;;  %p2192_p5 = scmp.lt.s32.totalorder %s2190_s0, %s2183_s2 }
  0x49   : > { %p2187_p4 = pneg %p2186_p0  ;;  %p2193_p9 = por %p2192_p5, %p2191_p7 }
  0x4b   : > { %p2194_p1 = pnand %p2193_p9, %p2187_p4 }
  0x4d   : > { %2197 = shalt.err (!%p2194_p1)
}
  0x4e   : > { %s3218_s25 = smov 64   ;;  %s3220_s26 = smov 4  }
  0x4f   : > { %1934 = dma.hbm_to_vmem [thread:$0]  (!%p2705_p11), %s2699_s10, 128, %s2694_s15, %s2709_s5, %s3218_s25, %s3218_s25, %s3220_s26  }
  0x50   : > { %s2741_s30 = sadd.s32 4294967295, %s2500_s13   ;;  %s215_s16 = sadd.s32 1, %s2444_s23 }
  0x51   : > { %p3224_p2 = scmp.eq.s32.totalorder %s2741_s30, 0  ;;  %p200_p4 = scmp.eq.s32.totalorder %s2741_s30, 31 }
  0x52   : > { %p225_p7 = scmp.ne.s32.totalorder %s2444_s23, %s2440_s22  ;;  %p3277_p8 = scmp.ne.s32.totalorder %s2464_s28, %s2460_s27 }
  0x53   : > { %p3280_p13 = scmp.ne.s32.totalorder %s2468_s29, %s2464_s28  ;;  %p3283_p11 = scmp.eq.s32.totalorder %s2679_s4, 0 }
  0x54   : > { %p2753_p10 = por %p3277_p8, %p3224_p2  ;;  %p2769_p12 = por %p225_p7, %p200_p4 }
  0x55   : > { %p2760_p3 = por %p200_p4, %p3280_p13  ;;  %p231_p0 = scmp.ne.s32.totalorder %s2440_s22, %s2436_s21 }
  0x56   : > { %s3278_s17 = scalar_select %p2753_p10, 1, 0 }
  0x57   : > { %s3281_s15 = scalar_select %p2760_p3, 1, 0 }
  0x58   : > { %3279 = sst [smem:[#allocation38_spill]] %s3278_s17  ;;  %p1640_p5 = scmp.ge.s32.totalorder %s2500_s13, 1 }
  0x59   : > { %3282 = sst [smem:[#allocation39_spill]] %s3281_s15  ;;  %p239_p9 = scmp.lt.s32.totalorder %s2500_s13, 33 }
  0x5a   : > { %s2767_s10 = scalar_select %p3283_p11, %s2444_s23, %s215_s16  }
  0x5b   : > { %s3285_s24 = scalar_select %p2769_p12, 1, 0 }
  0x5c   : > { %3284 = sst [smem:[#allocation40_spill]] %s2767_s10  ;;  %p2779_p1 = por %p231_p0, %p2662_p6 }
  0x5d   : > { %3286 = sst [smem:[#allocation41_spill]] %s3285_s24  ;;  %p2783_p8 = pnand %p1640_p5, %p239_p9 }
  0x5e   : > { %s3287_s2 = scalar_select %p2779_p1, 1, 0 }
  0x5f   : > { %s3289_s20 = scalar_select %p2783_p8, 1, 0 }
  0x60   : > { %3288 = sst [smem:[#allocation42_spill]] %s3287_s2  ;;  %s2505_s19 = smov [#allocation8]  }
  0x61   : > { %s251_s0 = sshll.u32 %s2505_s19, 4  ;;  %p1924_p4 = pneg %p2783_p8  ;;  %s252_s0 = int_to_ptr.vmem [resolvable:$true] %s251_s0 }
  0x62   : > { %s1638_s6 = sadd.s32 4294967295, %s2492_s11  ;;  %s3291_s3 = sld [smem:[#allocation47_spill]] }
  0x63   : > { %p2791_p7 = pnand %p1924_p4, %p3224_p2 }
  0x65   : > { %p2200_p13 = pneg %p2791_p7 }
  0x68   : > { %s2198_s1 = scalar_lea.hbm %s3291_s3, 9216 }
  0x69   : > { %p2199_p6 = scmp.ne.s32.totalorder %s3291_s3, %s2198_s1  ;;  %p2205_p5 = scmp.lt.u32.totalorder %s2198_s1, %s3291_s3 }
  0x6b   : > { %p2201_p11 = pnand %p2200_p13, %p2199_p6 }
  0x6d   : > { %p2202_p0 = pneg %p2201_p11 }
  0x6f   : > { %p2207_p9 = pnand %p2205_p5, %p2202_p0 }
  0x71   : > { %2210 = shalt.err (!%p2207_p9)
}
  0x72   : > { %s2211_s10 = scalar_lea.vmem %s252_s0, 9216  ;;  %p2219_p12 = scmp.lt.s32.totalorder %s252_s0, %s252_s0 }
  0x73   : > { %p2212_p4 = scmp.ne.s32.totalorder %s252_s0, %s2211_s10  ;;  %p2220_p3 = scmp.lt.s32.totalorder %s2211_s10, %s2211_s10 }
  0x75   : > { %p2214_p2 = pnand %p2212_p4, %p2200_p13  ;;  %p2221_p10 = por %p2220_p3, %p2219_p12 }
  0x77   : > { %p2215_p1 = pneg %p2214_p2 }
  0x79   : > { %p2222_p8 = pnand %p2221_p10, %p2215_p1 }
  0x7b   : > { %2225 = shalt.err (!%p2222_p8)
}
  0x7c   : > { %s3292_s9 = smov 4   ;;  %s3293_s12 = smov 64  }
  0x7d   : > { %s3294_s1 = sld [smem:[#allocation27_spill]]  ;;  %p47_p2 = scmp.gt.s32.totalorder %s1638_s6, 0 }
  0x7e   : > { %1927 = dma.hbm_to_vmem [thread:$0]  (!%p2791_p7), %s3291_s3, 9216, %s252_s0, [#allocation9], %s3293_s12, %s3293_s12, %s3292_s9  }
  0x7f   : > { %s1639_s29 = sadd.s32 4294967295, %s2644_s18  ;;  %s57_s10 = sadd.s32 1, %s2480_s8 }
  0x80   : > { %p50_p10 = scmp.gt.s32.totalorder %s1639_s29, 0  ;;  %s3369_s6 = smov (!%p47_p2, %s1638_s6), 0 }
  0x81   : > { %p64_p3 = scmp.ne.s32.totalorder %s2480_s8, %s2476_s7  ;;  %s268_s19 = sand.u32 1, %s2480_s8  }
  0x82   : > { %s3371_s29 = smov (!%p50_p10, %s1639_s29), 0  ;;  %p3295_p1 = scmp.eq.s32.totalorder %s2500_s13, 0 }
  0x83   : > { %p70_p12 = scmp.ne.s32.totalorder %s2476_s7, %s3294_s1  ;;  %s53_s16 = ssub.s32 %s3369_s6, %s3371_s29 }
  0x84   : > { %s54_s25 = sor.u32 %s53_s16, %s2679_s4  ;;  %p66_p8 = por %p3295_p1, %p64_p3 }
  0x85   : > { %p55_p6 = scmp.eq.s32.totalorder %s54_s25, 0  ;;  %p3296_p13 = scmp.eq.s32.totalorder %s2741_s30, 0 }
  0x86   : > { %s1643_s26 = sshll.u32 %s268_s19, 3  ;;  %s1645_s11 = sshll.u32 %s3369_s6, 1 }
  0x87   : > { %p2827_p11 = por %p3296_p13, %p70_p12  ;;  %s281_s23 = sadd.s32 %s2685_s14, %s1645_s11 }
  0x88   : > { %s2832_s3 = scalar_select %p55_p6, %s2480_s8, %s57_s10  }
  0x89   : > { %s272_s2 = scalar_lea.vmem [#allocation2], %s1643_s26  ;;  %s1647_s1 = sshll.u32 %s281_s23, 6 }
  0x8a   : > { %3298 = sst [smem:[#allocation43_spill]] %s2832_s3  ;;  %s284_s21 = sshll.u32 %s272_s2, 4  ;;  %s2835_s21 = int_to_ptr.vmem [resolvable:$true] %s284_s21 }
  0x8b   : > { %s3299_s27 = sld [smem:[#allocation44_spill]]  ;;  %p3301_p7 = scmp.lt.s32.totalorder %s2500_s13, 32 }
  0x8c   : > { %s2848_s11 = scalar_lea.sflag [#allocation3], %s268_s19 }
  0x8d   : > { %p2844_p0 = pnand %p3301_p7, %p66_p8 }
  0x8f   : > { %p2228_p9 = pneg %p2844_p0 }
  0x91   : > { %s3300_s15 = smov %s3299_s27  ;;  %s2840_s24 = scalar_lea.hbm %s3299_s27, %s1647_s1 }
  0x92   : > { %s2226_s23 = scalar_lea.hbm %s2840_s24, 128  ;;  %s2231_s6 = scalar_lea.hbm %s3300_s15, 4096 }
  0x93   : > { %p2227_p5 = scmp.ne.s32.totalorder %s2840_s24, %s2226_s23  ;;  %p2232_p10 = scmp.lt.u32.totalorder %s2840_s24, %s3300_s15 }
  0x94   : > { %p2233_p3 = scmp.lt.u32.totalorder %s2231_s6, %s2226_s23  ;;  %p2235_p1 = scmp.lt.u32.totalorder %s2226_s23, %s2840_s24 }
  0x95   : > { %p2229_p4 = pnand %p2228_p9, %p2227_p5 }
  0x96   : > { %p2234_p12 = por %p2233_p3, %p2232_p10 }
  0x97   : > { %p2230_p2 = pneg %p2229_p4 }
  0x98   : > { %p2236_p8 = por %p2235_p1, %p2234_p12 }
  0x9a   : > { %p2237_p6 = pnand %p2236_p8, %p2230_p2 }
  0x9c   : > { %2240 = shalt.err (!%p2237_p6)
}
  0x9d   : > { %s2241_s19 = scalar_lea.vmem %s2835_s21, 128  ;;  %s2506_s1 = smov [#allocation2]  }
  0x9e   : > { %p2242_p13 = scmp.ne.s32.totalorder %s2835_s21, %s2241_s19  ;;  %s2246_s29 = sshll.u32 %s2506_s1, 4  ;;  %s2247_s29 = int_to_ptr.vmem [resolvable:$false] %s2246_s29 }
  0x9f   : > { %s2248_s16 = scalar_lea.vmem %s2247_s29, 256  ;;  %p2249_p4 = scmp.lt.s32.totalorder %s2835_s21, %s2247_s29 }
  0xa0   : > { %p2244_p7 = pnand %p2242_p13, %p2228_p9  ;;  %p2250_p10 = scmp.lt.s32.totalorder %s2248_s16, %s2241_s19 }
  0xa2   : > { %p2245_p5 = pneg %p2244_p7  ;;  %p2251_p3 = por %p2250_p10, %p2249_p4 }
  0xa4   : > { %p2252_p12 = pnand %p2251_p3, %p2245_p5 }
  0xa6   : > { %2255 = shalt.err (!%p2252_p12)
}
  0xa7   : > { %s3303_s23 = sld [smem:[#allocation33_spill]]  ;;  %s3305_s2 = sld [smem:[#allocation23_spill]] }
  0xa8   : > { %s3304_s27 = sld [smem:[#allocation24_spill]]  ;;  %s3306_s6 = sld [smem:[#allocation22_spill]] }
  0xa9   : > { %1931 = dma.hbm_to_vmem [thread:$0]  (!%p2844_p0), %s2840_s24, 128, %s2835_s21, %s2848_s11, %s3293_s12, %s3293_s12, %s3292_s9  }
  0xaa   : > { %s111_s10 = sadd.s32 1, %s2644_s18  ;;  %p3307_p6 = scmp.eq.s32.totalorder %s2500_s13, 0 }
  0xab   : > { %p112_p2 = scmp.lt.s32.totalorder %s111_s10, 15  ;;  %p3309_p7 = scmp.eq.s32.totalorder %s2741_s30, 0 }
  0xac   : > { %s3311_s8 = sld [smem:[#allocation46_spill]]  ;;  %p3313_p4 = scmp.lt.s32.totalorder %s2500_s13, 32 }
  0xad   : > { %p109_p9 = scmp.lt.s32.totalorder %s3303_s23, 15  ;;  %s3375_s10 = smov (!%p112_p2, %s111_s10), 15 }
  0xae   : > { %s119_s25 = sadd.s32 1, %s3304_s27  ;;  %p126_p1 = scmp.ne.s32.totalorder %s3304_s27, %s3305_s2 }
  0xaf   : > { %s3373_s23 = smov (!%p109_p9, %s3303_s23), 15  ;;  %p132_p8 = scmp.ne.s32.totalorder %s3305_s2, %s3306_s6 }
  0xb0   : > { %s319_s26 = sand.u32 1, %s3304_s27   ;;  %p2890_p13 = por %p126_p1, %p3307_p6 }
  0xb1   : > { %p2896_p0 = por %p132_p8, %p3309_p7  ;;  %s115_s24 = ssub.s32 %s3373_s23, %s3375_s10 }
  0xb2   : > { %s1652_s11 = sshll.u32 %s319_s26, 3  ;;  %s116_s1 = sor.u32 %s115_s24, %s2679_s4 }
  0xb3   : > { %s3310_s21 = scalar_select %p2896_p0, 1, 0 }
  0xb4   : > { %p117_p5 = scmp.eq.s32.totalorder %s116_s1, 0  ;;  %s1653_s29 = sshll.u32 %s3373_s23, 1 }
  0xb5   : > { %s330_s16 = sadd.s32 %s1653_s29, %s2685_s14  ;;  %s321_s2 = scalar_lea.vmem [#allocation7], %s1652_s11 }
  0xb6   : > { %s333_s6 = sshll.u32 %s321_s2, 4  ;;  %s3377_s27 = smov (!%p117_p5, %s3304_s27), %s119_s25  ;;  %s2905_s6 = int_to_ptr.vmem [resolvable:$true] %s333_s6 }
  0xb7   : > { %s1655_s15 = sshll.u32 %s330_s16, 6  ;;  %s3312_s17 = smov %s3311_s8 }
  0xb8   : > { %s2910_s22 = scalar_lea.hbm %s3311_s8, %s1655_s15  ;;  %p2916_p10 = pnand %p3313_p4, %p2890_p13 }
  0xb9   : > { %s2256_s14 = scalar_lea.hbm %s2910_s22, 128  ;;  %s2261_s18 = scalar_lea.hbm %s3312_s17, 4096 }
  0xba   : > { %p2257_p3 = scmp.ne.s32.totalorder %s2910_s22, %s2256_s14  ;;  %p2258_p12 = pneg %p2916_p10 }
  0xbb   : > { %p2262_p1 = scmp.lt.u32.totalorder %s2910_s22, %s3312_s17  ;;  %p2263_p8 = scmp.lt.u32.totalorder %s2261_s18, %s2256_s14 }
  0xbc   : > { %p2259_p9 = pnand %p2258_p12, %p2257_p3  ;;  %p2265_p13 = scmp.lt.u32.totalorder %s2256_s14, %s2910_s22 }
  0xbd   : > { %p2264_p6 = por %p2263_p8, %p2262_p1 }
  0xbe   : > { %p2260_p2 = pneg %p2259_p9 }
  0xbf   : > { %p2266_p7 = por %p2265_p13, %p2264_p6 }
  0xc1   : > { %p2267_p5 = pnand %p2266_p7, %p2260_p2 }
  0xc3   : > { %2270 = shalt.err (!%p2267_p5)
}
  0xc4   : > { %s2271_s10 = scalar_lea.vmem %s2905_s6, 128  ;;  %s2507_s25 = smov [#allocation7]  }
  0xc5   : > { %p2272_p4 = scmp.ne.s32.totalorder %s2905_s6, %s2271_s10  ;;  %s2276_s26 = sshll.u32 %s2507_s25, 4  ;;  %s2277_s26 = int_to_ptr.vmem [resolvable:$false] %s2276_s26 }
  0xc6   : > { %s2278_s19 = scalar_lea.vmem %s2277_s26, 256  ;;  %p2279_p0 = scmp.lt.s32.totalorder %s2905_s6, %s2277_s26 }
  0xc7   : > { %p2274_p3 = pnand %p2272_p4, %p2258_p12  ;;  %p2280_p1 = scmp.lt.s32.totalorder %s2278_s19, %s2271_s10 }
  0xc9   : > { %p2275_p9 = pneg %p2274_p3  ;;  %p2281_p8 = por %p2280_p1, %p2279_p0 }
  0xcb   : > { %p2282_p6 = pnand %p2281_p8, %p2275_p9 }
  0xcd   : > { %2285 = shalt.err (!%p2282_p6)
}
  0xce   : > { %1937 = dma.hbm_to_vmem [thread:$0]  (!%p2916_p10), %s2910_s22, 128, %s2905_s6, %s2709_s5, %s3293_s12, %s3293_s12, %s3292_s9  }
  0xcf   : > { %p3315_p12 = scmp.ne.s32.totalorder %s3289_s20, 0 }
  0xd0   : > { %s347_s24 = sand.u32 (!%p3315_p12), 1, %s2476_s7  }
  0xd1   : > { %345 = sbr.rel (%p3315_p12) target bundleno = 621 (0x26d), region = 40  ;;  %s2952_s11 = sshll.u32 (!%p3315_p12), %s347_s24, 3 }
  0xd2   : > { %s348_s1 = scalar_lea.sflag (!%p3315_p12), [#allocation3], %s347_s24  ;;  %s351_s29 = scalar_lea.vmem (!%p3315_p12), [#allocation2], %s2952_s11 }
  0xd8   : > { %2411 = dma.done.wait (%p2827_p11), %s348_s1, 128  }
  0xd9   : > { %2413 = vsyncadd (%p2827_p11), %s348_s1, 4294967168  ;;  %s3316_s22 = sld [smem:[#allocation38_spill]]  ;;  %s356_s5 = sand.u32 1, %s2741_s30  }
  0xda   : > { %s358_s20 = sand.u32 1, %s2464_s28   ;;  %s357_s12 = scalar_lea.sflag [#allocation6], %s356_s5 }
  0xdb   : > { %s2963_s9 = sshll.u32 %s358_s20, 3 }
  0xdc   : > { %s360_s16 = scalar_lea.vmem [#allocation5], %s2963_s9 }
  0xdf   : > { %p3317_p0 = scmp.ne.s32.totalorder %s3316_s22, 0 }
  0xe1   : > { %2415 = dma.done.wait (%p3317_p0), %s357_s12, 128  }
  0xe2   : > { %2417 = vsyncadd (%p3317_p0), %s357_s12, 4294967168  ;;  %s3318_s2 = sld [smem:[#allocation23_spill]]  ;;  %p3319_p11 = scmp.ne.s32.totalorder %s3310_s21, 0 }
  0xe8   : > { %s367_s0 = sand.u32 1, %s3318_s2  }
  0xe9   : > { %s2971_s6 = sshll.u32 %s367_s0, 3 }
  0xea   : > { %s369_s4 = scalar_lea.vmem [#allocation7], %s2971_s6 }
  0xeb   : > { %2419 = dma.done.wait (%p3319_p11), %s357_s12, 128  }
  0xec   : > { %2421 = vsyncadd (%p3319_p11), %s357_s12, 4294967168  ;;  %p3320_p10 = scmp.eq.s32.totalorder %s2741_s30, 0 }
  0xee   : > { %2423 = dma.done.wait (%p3320_p10), [#allocation9], 9216   ;;  %p3321_p2 = pmov %p3320_p10 }
  0xef   : > { %s3322_s14 = sld [smem:[#allocation20_spill]]  ;;  %s409_s18 = scalar_lea.vmem [#allocation10], %s2963_s9 }
  0xf0   : > { %2425 = vsyncadd (%p3321_p2), [#allocation9], 4294958080  ;;  %s3323_s23 = sld [smem:[#allocation29_spill]] }
  0xf5   : > { %s414_s3 = sand.u32 1, %s3322_s14  }
  0xf6   : > { %s1662_s8 = sshll.u32 %s414_s3, 1  ;;  %p1663_p13 = scmp.ne.s32.totalorder %s3323_s23, 0 }
  0xf7   : > { %s2986_s15 = scalar_lea.vmem [#allocation11], %s1662_s8  ;;  %v2508_v0 = vmov (!%p1663_p13), 0.0  }
  0xf8   : > { %427 = sbr.rel (%p1663_p13) target bundleno = 255 (0xff), region = 60  ;;  %428 = vst [vmem:[%s2986_s15] sm:$0x3] (!%p1663_p13), %v2508_v0 }
  0xff PF: > { %v2093_v1 = vld [vmem:[#allocation8 + $0x40] sm:$0xff]   ;;  %v2509_v2 = vmov 0.0   ;;  %v2096_v5 = vld [vmem:[#allocation8 + $0x48] sm:$0xff]   ;;  %vm2510_vm0 = vmmov 0   ;;  %v2099_v8 = vld [vmem:[#allocation8 + $0x50] sm:$0xff]   ;;  %vm445_vm1 = vcmask 1040384  }
 0x100   : > { %1850 = vmatprep.subr.bf16.mxu1 %v2509_v2  ;;  %v2094_v3 = vld [vmem:[#allocation8] sm:$0xff]   ;;  %1757 = vmatprep.subr.bf16.mxu0 %v2093_v1  ;;  %v2097_v6 = vld [vmem:[#allocation8 + $0x8] sm:$0xff]   ;;  %v2100_v9 = vld [vmem:[#allocation8 + $0x10] sm:$0xff]   ;;  %vm446_vm2 = vsmask.f32 256  ;;  %vm466_vm4 = vcmask 1046528  }
 0x101   : > { %v2095_v4 = vld [vmem:[#allocation8 + $0x80] sm:$0xff]   ;;  %1758 = vmatpush3.bf16.msra.mxu0 %v2094_v3  ;;  %1866 = vmatprep.mubr.msk.bf16.mxu1 %vm2510_vm0, %v2509_v2  ;;  %v2098_v7 = vld [vmem:[#allocation8 + $0x88] sm:$0xff]   ;;  %v2101_v10 = vld [vmem:[#allocation8 + $0x90] sm:$0xff]   ;;  %vm450_vm5 = vsmask.f32 7424  ;;  %s3326_s30 = sld [smem:[#allocation29_spill]] }
 0x102   : > { %1851 = vmatpush3.bf16.msra.mxu1 %v2095_v4  ;;  %1759 = vmatprep.subr.bf16.mxu0 %v2096_v5  ;;  %v2102_v11 = vld [vmem:[#allocation8 + $0x58] sm:$0xff]   ;;  %v2105_v14 = vld [vmem:[#allocation8 + $0x60] sm:$0xff]   ;;  %v2108_v17 = vld [vmem:[#allocation8 + $0x68] sm:$0xff]   ;;  %s3327_s10 = sld [smem:[#allocation30_spill]]  ;;  %s3328_s1 = sld [smem:[#allocation48_spill]] }
 0x103   : > { %1852 = vmatprep.subr.bf16.mxu1 %v2509_v2  ;;  %v2103_v12 = vld [vmem:[#allocation8 + $0x18] sm:$0xff]   ;;  %v2106_v15 = vld [vmem:[#allocation8 + $0x20] sm:$0xff]   ;;  %v2109_v18 = vld [vmem:[#allocation8 + $0x28] sm:$0xff]   ;;  %s3329_s22 = sld [smem:[#allocation39_spill]]  ;;  %s1442_s5 = sshll.u32 %s409_s18, 4  ;;  %s3060_s5 = int_to_ptr.vmem [resolvable:$true] %s1442_s5 }
 0x104   : > { %v2104_v13 = vld [vmem:[#allocation8 + $0x98] sm:$0xff]   ;;  %v2107_v16 = vld [vmem:[#allocation8 + $0xa0] sm:$0xff]   ;;  %v2110_v19 = vld [vmem:[#allocation8 + $0xa8] sm:$0xff]   ;;  %s3330_s0 = sld [smem:[#allocation49_spill]]  ;;  %s2286_s14 = scalar_lea.vmem %s3060_s5, 128 }
 0x105   : > { %1760 = vmatpush3.bf16.msra.mxu0 %v2097_v6  ;;  %v2111_v20 = vld [vmem:[#allocation8 + $0x70] sm:$0xff]   ;;  %v2114_v23 = vld [vmem:[#allocation8 + $0x78] sm:$0xff]   ;;  %v2118_v29 = vld [vmem:[#allocation8 + $0x100] sm:$0xff]   ;;  %p2287_p4 = scmp.ne.s32.totalorder %s3060_s5, %s2286_s14  ;;  %s2511_s8 = smov [#allocation10]  }
 0x106   : > { %1853 = vmatpush3.bf16.msra.mxu1 %v2098_v7  ;;  %1761 = vmatprep.subr.bf16.mxu0 %v2099_v8  ;;  %v2112_v21 = vld [vmem:[#allocation8 + $0x30] sm:$0xff]   ;;  %v2115_v24 = vld [vmem:[#allocation8 + $0x38] sm:$0xff]   ;;  %vm3003_vm3 = vmand %vm445_vm1, %vm446_vm2  ;;  %s2290_s23 = sshll.u32 %s2511_s8, 4  ;;  %s2291_s23 = int_to_ptr.vmem [resolvable:$false] %s2290_s23 }
 0x107   : > { %1854 = vmatprep.subr.bf16.mxu1 %v2509_v2  ;;  %v2113_v22 = vld [vmem:[#allocation8 + $0xb0] sm:$0xff]   ;;  %v2116_v26 = vld [vmem:[#allocation8 + $0xb8] sm:$0xff]   ;;  %v2120_v40 = vld [vmem:[#allocation8 + $0x140] sm:$0xff]   ;;  %p520_p7 = scmp.gt.s32.totalorder %s3326_s30, 0  ;;  %p1062_p5 = scmp.lt.s32.totalorder %s3326_s30, 15 }
 0x108   : > { %v2117_v25 = vld [vmem:[%s351_s29] sm:$0xff]   ;;  %v2123_v45 = vld [vmem:[#allocation8 + $0x148] sm:$0xff]   ;;  %v2119_v46 = vld [vmem:[#allocation8 + $0xc0] sm:$0xff]   ;;  %s1744_s26 = sshll.u32 %s3326_s30, 1  ;;  %s1745_s19 = sshll.u32 %s3327_s10, 5 }
 0x109   : > { %1762 = vmatpush3.bf16.msra.mxu0 %v2100_v9  ;;  %v530_v27 = vshrl.u32 %v2117_v25, 16  ;;  %v533_v28 = vshll.u32 %v2117_v25, 16  ;;  %v2121_v48 = vld [vmem:[#allocation8 + $0x108] sm:$0xff]   ;;  %v2126_v49 = vld [vmem:[#allocation8 + $0x150] sm:$0xff]   ;;  %v2129_v52 = vld [vmem:[#allocation8 + $0x158] sm:$0xff]   ;;  %s1439_s29 = sadd.s32 %s1745_s19, %s1744_s26  ;;  %p3331_p3 = scmp.ne.s32.totalorder %s3329_s22, 0 }
 0x10a   : > { %1855 = vmatpush3.bf16.msra.mxu1 %v2101_v10  ;;  %1763 = vmatprep.subr.bf16.mxu0 %v2102_v11  ;;  %v2122_v50 = vld [vmem:[#allocation8 + $0xc8] sm:$0xff]   ;;  %v2124_v51 = vld [vmem:[#allocation8 + $0x110] sm:$0xff]   ;;  %v2127_v54 = vld [vmem:[#allocation8 + $0x118] sm:$0xff]   ;;  %s521_s21 = scalar_select %p520_p7, 1.0, 0.0 }
 0x10b   : > { %1856 = vmatprep.subr.bf16.mxu1 %v2509_v2  ;;  %v532_v30 = vrot.slane %v530_v27, 7  ;;  %v2125_v53 = vld [vmem:[#allocation8 + $0xd0] sm:$0xff]   ;;  %v2128_v55 = vld [vmem:[#allocation8 + $0xd8] sm:$0xff]   ;;  %v2132_v56 = vld [vmem:[#allocation8 + $0x160] sm:$0xff]   ;;  %s1063_s25 = scalar_select %p1062_p5, 1.0, 0.0 }
 0x10c   : > { %v2142_v57 = vld [vmem:[%s360_s16] sm:$0xff]   ;;  %v2138_v4 = vld [vmem:[#allocation8 + $0x170] sm:$0xff]   ;;  %v2141_v9 = vld [vmem:[#allocation8 + $0x178] sm:$0xff]   ;;  %s1746_s12 = sshll.u32 %s1439_s29, 6  ;;  %p2288_p9 = pnand %p2287_p4, %p3331_p3 }
 0x10d   : > { %1764 = vmatpush3.bf16.msra.mxu0 %v2103_v12  ;;  %v535_v32 = vor.u32 %v533_v28, %v532_v30  ;;  %v539_v33 = vsel %vm3003_vm3, %v532_v30, 0  ;;  %v2130_v58 = vld [vmem:[#allocation8 + $0x120] sm:$0xff]   ;;  %v437_v59 = vshrl.u32 %v2142_v57, 16  ;;  %v440_v60 = vshll.u32 %v2142_v57, 16  ;;  %v2135_v61 = vld [vmem:[#allocation8 + $0x168] sm:$0xff]   ;;  %v2136_v8 = vld [vmem:[#allocation8 + $0x130] sm:$0xff]   ;;  %s3065_s6 = scalar_lea.hbm %s3330_s0, %s1746_s12  ;;  %p2293_p8 = scmp.lt.s32.totalorder %s3060_s5, %s2291_s23 }
 0x10e   : > { %1857 = vmatpush3.bf16.msra.mxu1 %v2104_v13  ;;  %1765 = vmatprep.subr.bf16.mxu0 %v2105_v14  ;;  %v548_v34 = vshll.u32 %v539_v33, 16  ;;  %v556_v35 = vrot.slane %v539_v33, 1  ;;  %v2131_v62 = vld [vmem:[#allocation8 + $0xe0] sm:$0xff]   ;;  %v2133_v0 = vld [vmem:[#allocation8 + $0x128] sm:$0xff]   ;;  %v2151_v27 = vld [vmem:[#allocation8 + $0x210] sm:$0xff]   ;;  %p2289_p1 = pneg %p2288_p9  ;;  %s2292_s30 = scalar_lea.vmem %s2291_s23, 256 }
 0x10f   : > { %1858 = vmatprep.subr.bf16.mxu1 %v2509_v2  ;;  %v538_v36 = vsel %vm3003_vm3, 0, %v535_v32  ;;  %v439_v63 = vrot.slane %v437_v59, 7  ;;  %v2134_v6 = vld [vmem:[#allocation8 + $0xe8] sm:$0xff]   ;;  %v2144_v25 = vld [vmem:[#allocation8 + $0x180] sm:$0xff]   ;;  %v2167_v30 = vld [vmem:[%s369_s4] sm:$0xff]   ;;  %s3071_s4 = scalar_lea.sflag [#allocation4], %s358_s20  ;;  %p2294_p6 = scmp.lt.s32.totalorder %s2292_s30, %s2286_s14 }
 0x110   : > { %v541_v37 = vshrl.u32 %v538_v36, 16  ;;  %v543_v38 = vshll.u32 %v538_v36, 16  ;;  %v555_v39 = vrot.slane %v538_v36, 1  ;;  %v550_v42 = vrot.slane %v548_v34, 1  ;;  %v2147_v28 = vld [vmem:[#allocation8 + $0x188] sm:$0xff]   ;;  %v2154_v32 = vld [vmem:[#allocation8 + $0x218] sm:$0xff]  }
 0x111   : > { %1766 = vmatpush3.bf16.msra.mxu0 %v2106_v15  ;;  %v442_v1 = vor.u32 %v440_v60, %v439_v63  ;;  %v449_v3 = vsel %vm3003_vm3, %v439_v63, 0  ;;  %v2150_v33 = vld [vmem:[#allocation8 + $0x190] sm:$0xff]   ;;  %v1072_v34 = vshrl.u32 %v2167_v30, 16  ;;  %v2164_v60 = vld [vmem:[#allocation8 + $0x1f8] sm:$0xff]   ;;  %p2295_p12 = por %p2294_p6, %p2293_p8 }
 0x112   : > { %1859 = vmatpush3.bf16.msra.mxu1 %v2107_v16  ;;  %1767 = vmatprep.subr.bf16.mxu0 %v2108_v17  ;;  %v545_v41 = vrot.slane %v543_v38, 1  ;;  %v557_v43 = vsel %vm466_vm4, %v555_v39, %v556_v35  ;;  %v459_v5 = vshll.u32 %v449_v3, 16  ;;  %v468_v13 = vrot.slane %v449_v3, 1  ;;  %v2137_v16 = vld [vmem:[#allocation8 + $0xf0] sm:$0xff]   ;;  %v2139_v17 = vld [vmem:[#allocation8 + $0x138] sm:$0xff]   ;;  %v2157_v38 = vld [vmem:[#allocation8 + $0x220] sm:$0xff]  }
 0x113   : > { %1860 = vmatprep.subr.bf16.mxu1 %v2509_v2  ;;  %v448_v7 = vsel %vm3003_vm3, 0, %v442_v1  ;;  %v1075_v35 = vshll.u32 %v2167_v30, 16  ;;  %v2153_v39 = vld [vmem:[#allocation8 + $0x198] sm:$0xff]   ;;  %v2161_v31 = vld [vmem:[#allocation8 + $0x1f0] sm:$0xff]   ;;  %p2296_p0 = pnand %p2295_p12, %p2289_p1 }
 0x114   : > { %v546_v44 = vor.u32 %v545_v41, %v541_v37  ;;  %v452_v10 = vshrl.u32 %v448_v7, 16  ;;  %v454_v11 = vshll.u32 %v448_v7, 16  ;;  %v461_v12 = vrot.slane %v459_v5, 1  ;;  %v2162_v59 = vld [vmem:[#allocation8 + $0x1b0] sm:$0xff]  }
 0x115   : > { %1768 = vmatpush3.bf16.msra.mxu0 %v2109_v18  ;;  %v467_v15 = vrot.slane %v448_v7, 1  ;;  %v1074_v37 = vrot.slane %v1072_v34, 7 }
 0x116   : > { %1861 = vmatpush3.bf16.msra.mxu1 %v2110_v19  ;;  %1769 = vmatprep.subr.bf16.mxu0 %v2111_v20  ;;  %v551_v47 = vsel %vm450_vm5, %v546_v44, %v550_v42  ;;  %v456_v14 = vrot.slane %v454_v11, 1  ;;  %v2155_v42 = vld [vmem:[#allocation8 + $0x1e0] sm:$0xff]  }
 0x117   : > { %1862 = vmatprep.subr.bf16.mxu1 %v2509_v2  ;;  %783 = vmatprep.mubr.bf16.mxu0 %v551_v47  ;;  %v469_v20 = vsel %vm466_vm4, %v467_v15, %v468_v13  ;;  %v1081_v41 = vsel %vm3003_vm3, %v1074_v37, 0  ;;  %v833_v15 = vstv %s521_s21 }
 0x118   : > { %v457_v18 = vor.u32 %v456_v14, %v452_v10 }
 0x119   : > { %1770 = vmatpush3.bf16.msra.mxu0 %v2112_v21  ;;  %v2145_v21 = vld [vmem:[#allocation8 + $0x200] sm:$0xff]  }
 0x11a   : > { %1863 = vmatpush3.bf16.msra.mxu1 %v2113_v22  ;;  %1771 = vmatprep.subr.bf16.mxu0 %v2114_v23  ;;  %v462_v19 = vsel %vm450_vm5, %v457_v18, %v461_v12  ;;  %v2140_v22 = vld [vmem:[#allocation8 + $0xf8] sm:$0xff]   ;;  %v2143_v23 = vld [vmem:[#allocation8 + $0x1c0] sm:$0xff]  }
 0x11b   : > { %1864 = vmatprep.subr.bf16.mxu1 %v2509_v2 }
 0x11d   : > { %1772 = vmatpush3.bf16.msra.mxu0 %v2115_v24  ;;  %v2148_v24 = vld [vmem:[#allocation8 + $0x208] sm:$0xff]  }
 0x11e   : > { %1865 = vmatpush3.bf16.msra.mxu1 %v2116_v26  ;;  %1788 = vmatprep.subr.bf16.mxu0 %v2118_v29  ;;  %v2146_v26 = vld [vmem:[#allocation8 + $0x1c8] sm:$0xff]   ;;  %v2149_v29 = vld [vmem:[#allocation8 + $0x1d0] sm:$0xff]  }
 0x11f   : > { %1870 = vmatprep.subr.bf16.mxu1 %v2509_v2 }
 0x120   : > { %784 = vmatmul.mubr.bf16.vlgmr.msra.gmra.mrb[0].mxu0 %v538_v36  ;;  %v2152_v36 = vld [vmem:[#allocation8 + $0x1d8] sm:$0xff]  }
 0x121   : > { %1867 = vmatmul.mubr.bf16.vlgmr.msra.gmra.mrb[0].mxu1 %v557_v43  ;;  %1789 = vmatpush3.bf16.msra.mxu0 %v2119_v46  ;;  %v1090_v43 = vshll.u32 %v1081_v41, 16 }
 0x122   : > { %1871 = vmatpush3.bf16.msra.mxu1 %v2120_v40  ;;  %1886 = vmatprep.mubr.msk.bf16.mxu1 %vm2510_vm0, %v2509_v2  ;;  %v1077_v40 = vor.u32 %v1075_v35, %v1074_v37  ;;  %v1376_v37 = vstv %s1063_s25 }
 0x123   : > { %1872 = vmatprep.subr.bf16.mxu1 %v2509_v2  ;;  %1790 = vmatprep.subr.bf16.mxu0 %v2121_v48  ;;  %v2156_v48 = vld [vmem:[#allocation8 + $0x1a0] sm:$0xff]  }
 0x124   : > { %1012 = vmatprep.mubr.bf16.mxu0 %v462_v19  ;;  %v1080_v44 = vsel %vm3003_vm3, 0, %v1077_v40 }
 0x125   : > { %1791 = vmatpush3.bf16.msra.mxu0 %v2122_v50  ;;  %v1083_v46 = vshrl.u32 %v1080_v44, 16  ;;  %v1085_v47 = vshll.u32 %v1080_v44, 16  ;;  %v1097_v57 = vrot.slane %v1080_v44, 1 }
 0x126   : > { %1873 = vmatpush3.bf16.msra.mxu1 %v2123_v45  ;;  %1792 = vmatprep.subr.bf16.mxu0 %v2124_v51  ;;  %v2160_v45 = vld [vmem:[#allocation8 + $0x228] sm:$0xff]   ;;  %v1092_v51 = vrot.slane %v1090_v43, 1  ;;  %v1739_v43 = vld [vmem:[%s3328_s1] ss:$0 sm:$0xff] }
 0x127   : > { %1874 = vmatprep.subr.bf16.mxu1 %v2509_v2  ;;  %v1087_v50 = vrot.slane %v1085_v47, 1 }
 0x129   : > { %1793 = vmatpush3.bf16.msra.mxu0 %v2125_v53  ;;  %v1088_v53 = vor.u32 %v1087_v50, %v1083_v46 }
 0x12a   : > { %1875 = vmatpush3.bf16.msra.mxu1 %v2126_v49  ;;  %1794 = vmatprep.subr.bf16.mxu0 %v2127_v54  ;;  %v2158_v49 = vld [vmem:[#allocation8 + $0x1e8] sm:$0xff]  }
 0x12b   : > { %1876 = vmatprep.subr.bf16.mxu1 %v2509_v2  ;;  %v2159_v54 = vld [vmem:[#allocation8 + $0x1a8] sm:$0xff]  }
 0x12d   : > { %1795 = vmatpush3.bf16.msra.mxu0 %v2128_v55  ;;  %v1093_v55 = vsel %vm450_vm5, %v1088_v53, %v1092_v51 }
 0x12e   : > { %1877 = vmatpush3.bf16.msra.mxu1 %v2129_v52  ;;  %1796 = vmatprep.subr.bf16.mxu0 %v2130_v58  ;;  %v2163_v52 = vld [vmem:[#allocation8 + $0x230] sm:$0xff]   ;;  %v1098_v58 = vrot.slane %v1081_v41, 1 }
 0x12f   : > { %1878 = vmatprep.subr.bf16.mxu1 %v2509_v2 }
 0x131   : > { %1797 = vmatpush3.bf16.msra.mxu0 %v2131_v62  ;;  %v2165_v62 = vld [vmem:[#allocation8 + $0x1b8] sm:$0xff]  }
 0x132   : > { %1879 = vmatpush3.bf16.msra.mxu1 %v2132_v56  ;;  %1798 = vmatprep.subr.bf16.mxu0 %v2133_v0  ;;  %v2166_v56 = vld [vmem:[#allocation8 + $0x238] sm:$0xff]  }
 0x133   : > { %1880 = vmatprep.subr.bf16.mxu1 %v2509_v2 }
 0x135   : > { %1799 = vmatpush3.bf16.msra.mxu0 %v2134_v6 }
 0x136   : > { %1881 = vmatpush3.bf16.msra.mxu1 %v2135_v61  ;;  %1800 = vmatprep.subr.bf16.mxu0 %v2136_v8  ;;  %v1099_v61 = vsel %vm466_vm4, %v1097_v57, %v1098_v58 }
 0x137   : > { %1882 = vmatprep.subr.bf16.mxu1 %v2509_v2 }
 0x139   : > { %1801 = vmatpush3.bf16.msra.mxu0 %v2137_v16 }
 0x13a   : > { %1883 = vmatpush3.bf16.msra.mxu1 %v2138_v4  ;;  %1802 = vmatprep.subr.bf16.mxu0 %v2139_v17 }
 0x13b   : > { %1884 = vmatprep.subr.bf16.mxu1 %v2509_v2 }
 0x13d   : > { %1803 = vmatpush3.bf16.msra.mxu0 %v2140_v22 }
 0x13e   : > { %1885 = vmatpush3.bf16.msra.mxu1 %v2141_v9  ;;  %1819 = vmatprep.subr.bf16.mxu0 %v2143_v23 }
 0x13f   : > { %1890 = vmatprep.subr.bf16.mxu1 %v2509_v2 }
 0x140   : > { %1013 = vmatmul.mubr.bf16.vlgmr.msra.gmra.mrb[4].mxu0 %v448_v7 }
 0x141   : > { %1887 = vmatmul.mubr.bf16.vlgmr.msra.gmra.mrb[4].mxu1 %v469_v20  ;;  %1820 = vmatpush3.bf16.msra.mxu0 %v2144_v25 }
 0x142   : > { %1891 = vmatpush3.bf16.msra.mxu1 %v2145_v21  ;;  %1906 = vmatprep.mubr.msk.bf16.mxu1 %vm2510_vm0, %v2509_v2 }
 0x143   : > { %1892 = vmatprep.subr.bf16.mxu1 %v2509_v2  ;;  %1821 = vmatprep.subr.bf16.mxu0 %v2146_v26 }
 0x144   : > { %1326 = vmatprep.mubr.bf16.mxu0 %v1093_v55 }
 0x145   : > { %1822 = vmatpush3.bf16.msra.mxu0 %v2147_v28 }
 0x146   : > { %1893 = vmatpush3.bf16.msra.mxu1 %v2148_v24  ;;  %1823 = vmatprep.subr.bf16.mxu0 %v2149_v29 }
 0x147   : > { %1894 = vmatprep.subr.bf16.mxu1 %v2509_v2 }
 0x149   : > { %1824 = vmatpush3.bf16.msra.mxu0 %v2150_v33 }
 0x14a   : > { %1895 = vmatpush3.bf16.msra.mxu1 %v2151_v27  ;;  %1825 = vmatprep.subr.bf16.mxu0 %v2152_v36 }
 0x14b   : > { %1896 = vmatprep.subr.bf16.mxu1 %v2509_v2 }
 0x14d   : > { %1826 = vmatpush3.bf16.msra.mxu0 %v2153_v39 }
 0x14e   : > { %1897 = vmatpush3.bf16.msra.mxu1 %v2154_v32  ;;  %1827 = vmatprep.subr.bf16.mxu0 %v2155_v42 }
 0x14f   : > { %1898 = vmatprep.subr.bf16.mxu1 %v2509_v2 }
 0x151   : > { %1828 = vmatpush3.bf16.msra.mxu0 %v2156_v48 }
 0x152   : > { %1899 = vmatpush3.bf16.msra.mxu1 %v2157_v38  ;;  %1829 = vmatprep.subr.bf16.mxu0 %v2158_v49 }
 0x153   : > { %1900 = vmatprep.subr.bf16.mxu1 %v2509_v2 }
 0x155   : > { %1830 = vmatpush3.bf16.msra.mxu0 %v2159_v54 }
 0x156   : > { %1901 = vmatpush3.bf16.msra.mxu1 %v2160_v45  ;;  %1831 = vmatprep.subr.bf16.mxu0 %v2161_v31 }
 0x157   : > { %1902 = vmatprep.subr.bf16.mxu1 %v2509_v2 }
 0x159   : > { %1832 = vmatpush3.bf16.msra.mxu0 %v2162_v59 }
 0x15a   : > { %1903 = vmatpush3.bf16.msra.mxu1 %v2163_v52  ;;  %1833 = vmatprep.subr.bf16.mxu0 %v2164_v60 }
 0x15b   : > { %1904 = vmatprep.subr.bf16.mxu1 %v2509_v2 }
 0x15d   : > { %1834 = vmatpush3.bf16.msra.mxu0 %v2165_v62 }
 0x15e   : > { %1905 = vmatpush3.bf16.msra.mxu1 %v2166_v56 }
 0x160   : > { %1327 = vmatmul.mubr.bf16.vlgmr.msra.gmra.mrb[8].mxu0 %v1080_v44 }
 0x161   : > { %1907 = vmatmul.mubr.bf16.vlgmr.msra.gmra.mrb[8].mxu1 %v1099_v61 }
 0x1f3   : > { %v1773_v4 = vpop.f32.mrb[0].mxu0 }
 0x1f4   : > { %v826_v63 = vpop.f32.mrb[0].mxu1  ;;  %v1774_v5 = vpop.f32.mrb[1].mxu0 }
 0x1f5   : > { %v1868_v0 = vpop.f32.mrb[1].mxu1  ;;  %v1775_v6 = vadd.f32 %v1774_v5, %v1773_v4  ;;  %v1776_v2 = vpop.f32.mrb[2].mxu0 }
 0x1f6   : > { %v829_v1 = vpop.f32.mrb[2].mxu1  ;;  %v1777_v7 = vpop.f32.mrb[3].mxu0 }
 0x1f7   : > { %v1869_v3 = vpop.f32.mrb[3].mxu1  ;;  %v827_v8 = vadd.f32 %v1775_v6, %v826_v63  ;;  %v1778_v9 = vadd.f32 %v1777_v7, %v1776_v2 }
 0x1f9   : > { %v830_v10 = vadd.f32 %v1778_v9, %v829_v1  ;;  %v834_v18 = vmul.f32 %v833_v15, %v827_v8 }
 0x1fb   : > { %v835_v22 = vmul.f32 %v833_v15, %v830_v10 }
 0x213   : > { %v1804_v16 = vpop.f32.mrb[4].mxu0 }
 0x214   : > { %v1055_v11 = vpop.f32.mrb[4].mxu1  ;;  %v1805_v17 = vpop.f32.mrb[5].mxu0 }
 0x215   : > { %v1888_v12 = vpop.f32.mrb[5].mxu1  ;;  %v1806_v19 = vadd.f32 %v1805_v17, %v1804_v16  ;;  %v1807_v20 = vpop.f32.mrb[6].mxu0 }
 0x216   : > { %v1058_v13 = vpop.f32.mrb[6].mxu1  ;;  %v1808_v21 = vpop.f32.mrb[7].mxu0 }
 0x217   : > { %v1889_v14 = vpop.f32.mrb[7].mxu1  ;;  %v1015_v23 = vadd.f32 %v1806_v19, %v834_v18  ;;  %v1809_v24 = vadd.f32 %v1808_v21, %v1807_v20 }
 0x219   : > { %v1056_v25 = vadd.f32 %v1055_v11, %v1015_v23  ;;  %v1018_v26 = vadd.f32 %v1809_v24, %v835_v22 }
 0x21b   : > { %v1059_v27 = vadd.f32 %v1058_v13, %v1018_v26 }
 0x233   : > { %v1835_v33 = vpop.f32.mrb[8].mxu0 }
 0x234   : > { %v1369_v28 = vpop.f32.mrb[8].mxu1  ;;  %v1836_v34 = vpop.f32.mrb[9].mxu0 }
 0x235   : > { %v1908_v29 = vpop.f32.mrb[9].mxu1  ;;  %v1837_v35 = vadd.f32 %v1836_v34, %v1835_v33  ;;  %v1838_v36 = vpop.f32.mrb[10].mxu0 }
 0x236   : > { %v1372_v30 = vpop.f32.mrb[10].mxu1  ;;  %v1839_v38 = vpop.f32.mrb[11].mxu0 }
 0x237   : > { %v1909_v32 = vpop.f32.mrb[11].mxu1  ;;  %v1370_v39 = vadd.f32 %v1837_v35, %v1369_v28  ;;  %v1840_v40 = vadd.f32 %v1839_v38, %v1838_v36 }
 0x239   : > { %v1377_v41 = vmul.f32 %v1376_v37, %v1370_v39  ;;  %v1373_v42 = vadd.f32 %v1840_v40, %v1372_v30 }
 0x23b   : > { %v1379_v44 = vadd.f32 %v1377_v41, %v1056_v25  ;;  %v1378_v45 = vmul.f32 %v1376_v37, %v1373_v42 }
 0x23d   : > { %v1388_v46 = vadd.f32 %v1739_v43, %v1379_v44  ;;  %v1380_v47 = vadd.f32 %v1378_v45, %v1059_v27 }
 0x23f   : > { %v1389_v48 = vadd.f32 %v1739_v43, %v1380_v47  ;;  %v1408_v49 = vmul.f32 %v1388_v46, %v1388_v46 }
 0x241   : > { %v1401_v50 = vadd.f32 %v1389_v48, %v1388_v46  ;;  %v1409_v51 = vmul.f32 %v1389_v48, %v1389_v48  ;;  %v1755_v52 = vpack.c.bf16 %v1389_v48, %v1388_v46 }
 0x243   : > { %v1402_v53 = vrot.slane %v1401_v50, 4  ;;  %v1410_v54 = vadd.f32 %v1409_v51, %v1408_v49  ;;  %1756 = vst [vmem:[%s409_s18] sm:$0xff] %v1755_v52  }
 0x244   : > { %2299 = shalt.err (!%p2296_p0)
}
 0x245   : > { %s2300_s20 = scalar_lea.hbm %s3065_s6, 128  ;;  %s2304_s21 = scalar_lea.hbm %s3330_s0, 4096 }
 0x246   : > { %p2301_p11 = scmp.ne.s32.totalorder %s3065_s6, %s2300_s20  ;;  %p2305_p13 = scmp.lt.u32.totalorder %s3065_s6, %s3330_s0 }
 0x247   : > { %p2306_p7 = scmp.lt.u32.totalorder %s2304_s21, %s2300_s20  ;;  %p2308_p4 = scmp.lt.u32.totalorder %s2300_s20, %s3065_s6 }
 0x248   : > { %p2302_p10 = pnand %p2301_p11, %p3331_p3 }
 0x249   : > { %p2307_p5 = por %p2306_p7, %p2305_p13 }
 0x24a   : > { %p2303_p2 = pneg %p2302_p10 }
 0x24b   : > { %p2309_p9 = por %p2308_p4, %p2307_p5 }
 0x24d   : > { %p2310_p1 = pnand %p2309_p9, %p2303_p2 }
 0x24f   : > { %2313 = shalt.err (!%p2310_p1)
}
 0x250   : > { %s2512_s24 = smov 64   ;;  %s2513_s11 = smov 4   ;;  %v1403_v31 = vadd.f32 %v1402_v53, %v1401_v50  ;;  %v1411_v55 = vrot.slane %v1410_v54, 4  ;;  %v1400_v63 = vld [vmem:[%s2986_s15] sm:$0x3] }
 0x251   : > { %1920 = dma.vmem_to_hbm [thread:$0]  (%p3331_p3), %s3060_s5, 128, %s3065_s6, %s3071_s4, %s2512_s24, %s2512_s24, %s2513_s11  }
 0x252   : > { %v1404_v56 = vrot.slane %v1403_v31, 2  ;;  %v1412_v57 = vadd.f32 %v1411_v55, %v1410_v54  ;;  %s3333_s29 = sld [smem:[#allocation41_spill]]  ;;  %s1458_s12 = sshll.u32 %s2986_s15, 4  ;;  %s3105_s12 = int_to_ptr.vmem [resolvable:$true] %s1458_s12 }
 0x253   : > { %s3334_s16 = sld [smem:[#allocation50_spill]]  ;;  %s1427_s6 = scalar_lea.sflag [#allocation12], %s414_s3 }
 0x254   : > { %v1405_v58 = vadd.f32 %v1404_v56, %v1403_v31  ;;  %v1413_v59 = vrot.slane %v1412_v57, 2  ;;  %s2314_s4 = scalar_lea.vmem %s3105_s12, 32  ;;  %s2514_s14 = smov [#allocation11]  }
 0x255   : > { %p2315_p3 = scmp.ne.s32.totalorder %s3105_s12, %s2314_s4  ;;  %s2318_s10 = sshll.u32 %s2514_s14, 4  ;;  %s2319_s10 = int_to_ptr.vmem [resolvable:$false] %s2318_s10 }
 0x256   : > { %v1406_v60 = vrot.slane %v1405_v58, 1  ;;  %v1414_v61 = vadd.f32 %v1413_v59, %v1412_v57  ;;  %s2320_s8 = scalar_lea.vmem %s2319_s10, 64  ;;  %p2321_p0 = scmp.lt.s32.totalorder %s3105_s12, %s2319_s10 }
 0x257   : > { %p2322_p11 = scmp.lt.s32.totalorder %s2320_s8, %s2314_s4 }
 0x258   : > { %v1415_v62 = vrot.slane %v1414_v61, 1  ;;  %v1407_v0 = vadd.f32 %v1406_v60, %v1405_v58  ;;  %p3335_p8 = scmp.ne.s32.totalorder %s3333_s29, 0 }
 0x259   : > { %s3103_s2 = scalar_lea.hbm %s3334_s16, %s1745_s19  ;;  %p2323_p10 = por %p2322_p11, %p2321_p0 }
 0x25a   : > { %v1416_v1 = vadd.f32 %v1415_v62, %v1414_v61  ;;  %p2316_p6 = pnand %p2315_p3, %p3335_p8 }
 0x25c   : > { %v1418_v3 = vsel %vm445_vm1, %v1407_v0, %v1416_v1  ;;  %p2317_p12 = pneg %p2316_p6 }
 0x25d   : > { %v1419_v4 = vadd.f32 %v1418_v3, %v1400_v63 }
 0x25e   : > { %p2324_p2 = pnand %p2323_p10, %p2317_p12 }
 0x25f   : > { %1420 = vst [vmem:[%s2986_s15] sm:$0x3] %v1419_v4 }
 0x260   : > { %2327 = shalt.err (!%p2324_p2)
}
 0x261   : > { %s2328_s3 = scalar_lea.hbm %s3103_s2, 32  ;;  %s2332_s23 = scalar_lea.hbm %s3334_s16, 64 }
 0x262   : > { %p2329_p13 = scmp.ne.s32.totalorder %s3103_s2, %s2328_s3  ;;  %p2333_p4 = scmp.lt.u32.totalorder %s3103_s2, %s3334_s16 }
 0x263   : > { %p2334_p9 = scmp.lt.u32.totalorder %s2332_s23, %s2328_s3  ;;  %p2336_p3 = scmp.lt.u32.totalorder %s2328_s3, %s3103_s2 }
 0x264   : > { %p2330_p7 = pnand %p2329_p13, %p3335_p8 }
 0x265   : > { %p2335_p1 = por %p2334_p9, %p2333_p4 }
 0x266   : > { %p2331_p5 = pneg %p2330_p7 }
 0x267   : > { %p2337_p6 = por %p2336_p3, %p2335_p1 }
 0x269   : > { %p2338_p12 = pnand %p2337_p6, %p2331_p5 }
 0x26b   : > { %2341 = shalt.err (!%p2338_p12)
}
 0x26c   : > { %1921 = dma.vmem_to_hbm [thread:$0]  (%p3335_p8), %s3105_s12, 32, %s3103_s2, %s1427_s6  }
 0x26d PF: > { %s3336_s9 = sld [smem:[#allocation25_spill]]  ;;  %s3337_s18 = sld [smem:[#allocation36_spill]] }
 0x26e   : > { %p1948_p0 = scmp.ge.s32.totalorder %s2500_s13, 2 }
 0x273   : > { %s1470_s21 = sand.u32 1, %s3336_s9   ;;  %p3338_p11 = scmp.ne.s32.totalorder %s3337_s18, 0 }
 0x274   : > { %s1471_s25 = scalar_lea.sflag [#allocation4], %s1470_s21 }
 0x275   : > { %p1939_p10 = pnand %p1948_p0, %p3338_p11 }
 0x277   : > { %2427 = dma.done.wait (!%p1939_p10), %s1471_s25, 128  }
 0x278   : > { %2429 = vsyncadd (!%p1939_p10), %s1471_s25, 4294967168  ;;  %s3339_s26 = sld [smem:[#allocation19_spill]]  ;;  %s3340_s24 = sld [smem:[#allocation42_spill]] }
 0x27e   : > { %s1479_s11 = sand.u32 1, %s3339_s26   ;;  %p3341_p2 = scmp.ne.s32.totalorder %s3340_s24, 0 }
 0x27f   : > { %s1480_s1 = scalar_lea.sflag [#allocation12], %s1479_s11 }
 0x280   : > { %p1942_p13 = pnand %p1948_p0, %p3341_p2 }
 0x282   : > { %2431 = dma.done.wait (!%p1942_p13), %s1480_s1, 32  }
 0x283   : > { %2433 = vsyncadd (!%p1942_p13), %s1480_s1, 4294967264  ;;  %s30_s13 = sadd.s32 1, %s2500_s13   ;;  %s3343_s21 = sld [smem:[#allocation20_spill]] }
 0x284   : > { %p3139_p8 = scmp.ge.s32.totalorder %s30_s13, 34   ;;  %s3344_s22 = sld [smem:[#allocation21_spill]] }
 0x285   : > { %s3345_s23 = sld [smem:[#allocation40_spill]]  ;;  %s3346_s24 = sld [smem:[#allocation23_spill]] }
 0x286   : > { %s3347_s25 = sld [smem:[#allocation24_spill]]  ;;  %s3348_s12 = sld [smem:[#allocation26_spill]] }
 0x287   : > { %s3349_s5 = sld [smem:[#allocation37_spill]]  ;;  %s3350_s2 = sld [smem:[#allocation28_spill]] }
 0x288   : > { %s3351_s8 = sld [smem:[#allocation43_spill]]  ;;  %s3352_s9 = sld [smem:[#allocation31_spill]] }
 0x289   : > { %s3353_s10 = sld [smem:[#allocation32_spill]]  ;;  %s3354_s11 = sld [smem:[#allocation34_spill]] }
 0x28a   : > { %s3355_s6 = sld [smem:[#allocation35_spill]]  ;;  %s3357_s26 = smov %s3377_s27 }
 0x28b   : > { %s3358_s27 = smov %s2464_s28  ;;  %s3361_s30 = smov %s2476_s7 }
 0x28c   : > { %s3359_s28 = smov %s3348_s12  ;;  %29 = sbr.rel (!%p3139_p8) target bundleno = 25 (0x19), region = 136 }
 0x28d   : > { %s3360_s29 = smov %s3349_s5  ;;  %s3362_s7 = smov %s3350_s2 }
 0x290   : > { %s3363_s12 = smov %s3355_s6 }
 0x293   :  { %1485 = vsyncpa [#allocation3], 1 }
 0x294   :  { %1487 = vsyncpa [#allocation3 + $0x1], 1 }
 0x295   :  { %1488 = vsyncpa [#allocation6], 1 }
 0x296   :  { %1490 = vsyncpa [#allocation6 + $0x1], 1 }
 0x297   :  { %1491 = vsyncpa [#allocation9], 1 }
 0x298   :  { %1492 = vsyncpa [#allocation4], 1 }
 0x299   :  { %1494 = vsyncpa [#allocation4 + $0x1], 1 }
 0x29a   :  { %1495 = vsyncpa [#allocation12], 1 }
 0x29b   :  { %1497 = vsyncpa [#allocation12 + $0x1], 1 }

</bundles_post_ra>
